<compile_context>
chip_gen: v7x
topology: tpu7x:2x2x1
jax: 0.10.0
libtpu: 0.0.40
codegen_flags: <defaults>
</compile_context>

<pallas_src>
import jax
import jax.numpy as jnp
from jax import lax
from jax.experimental import pallas as pl
from jax.experimental.pallas import tpu as pltpu

EPS = 1e-5  # nn.LayerNorm default eps


# ------------------------------------ Pallas kernel --------------------------------------
def _upsample_kernel(x_ref, w_ref, g_ref, b_ref, o_ref):
    # Fused: y = LayerNorm(x @ W) over the expanded channel dim.
    y = jnp.dot(x_ref[...], w_ref[...], preferred_element_type=jnp.float32)
    mu = jnp.mean(y, axis=-1, keepdims=True)
    var = jnp.mean((y - mu) * (y - mu), axis=-1, keepdims=True)
    o_ref[...] = (y - mu) * lax.rsqrt(var + EPS) * g_ref[...] + b_ref[...]


def upsample_forward(x, w, gamma, beta, *, tm=1024):
    """UpSample.forward.

    x:     (B, T, D, H, W, C) float32
    w:     (C, 2C)   -- equals torch linear1.weight.T (y = x @ w)
    gamma: (2C,), beta: (2C,) -- LayerNorm affine params
    returns (B, T, D, 2H, 2W, C // 2)
    """
    B, T, D, H, W, C = x.shape
    C2 = w.shape[1]
    M = B * T * D * H * W
    x2 = x.reshape(M, C)

    # Large row tiles; pad rows (not asserted) so any M works.
    tm = min(tm, M)
    grid_m = pl.cdiv(M, tm)
    Mp = grid_m * tm
    if Mp != M:
        x2 = jnp.pad(x2, ((0, Mp - M), (0, 0)))

    y = pl.pallas_call(
        _upsample_kernel,
        out_shape=jax.ShapeDtypeStruct((Mp, C2), jnp.float32),
        grid=(grid_m,),
        in_specs=[
            pl.BlockSpec((tm, C), lambda i: (i, 0)),
            pl.BlockSpec((C, C2), lambda i: (0, 0)),
            pl.BlockSpec((1, C2), lambda i: (0, 0)),
            pl.BlockSpec((1, C2), lambda i: (0, 0)),
        ],
        out_specs=pl.BlockSpec((tm, C2), lambda i: (i, 0)),
        compiler_params=pltpu.CompilerParams(dimension_semantics=("parallel",)),
    )(x2, w, gamma.reshape(1, C2), beta.reshape(1, C2))

    y = y[:M].reshape(B, T, D, H, W, C2)
    # permute(3,4,5,0,1,2) -> view(2H,2W,C//2,B,T,D) -> permute(3,4,5,0,1,2) collapses to
    # a plain reshape of the trailing (H, W, 2C) block; (B,T,D) are untouched.
    # TODO(synk): the torch code calls .view on a permuted (non-contiguous) tensor; we
    # implement the intended reshape (== .contiguous().view) semantics.
    return y.reshape(B, T, D, 2 * H, 2 * W, C // 2)


# ------------------------------------ pure-JAX reference ---------------------------------
def reference_forward(x, w, gamma, beta):
    B, T, D, H, W, C = x.shape
    y = x @ w
    mu = jnp.mean(y, axis=-1, keepdims=True)
    var = jnp.mean((y - mu) ** 2, axis=-1, keepdims=True)
    y = (y - mu) / jnp.sqrt(var + EPS) * gamma + beta
    y = jnp.transpose(y, (3, 4, 5, 0, 1, 2))              # (H, W, 2C, B, T, D)
    y = y.reshape(2 * H, 2 * W, C // 2, B, T, D)          # .view equivalent
    y = jnp.transpose(y, (3, 4, 5, 0, 1, 2))              # (B, T, D, 2H, 2W, C//2)
    return y


# ---------------------------------------------- main -------------------------------------
if __name__ == "__main__":
    key = jax.random.PRNGKey(0)
    k0, k1, k2, k3 = jax.random.split(key, 4)

    # Small shapes consistent with the module's (B, T, D, H, W, C) input.
    # dim=64 so the LayerNorm'd channel dim is 2C=128 (lane-dense output stores).
    B, T, D, H, W, C = 2, 2, 2, 8, 8, 64
    x = jax.random.normal(k0, (B, T, D, H, W, C), jnp.float32)

    # Linear weight stored as (in, out) = torch weight.T, so y = x @ w (bias=False).
    w = 0.05 * jax.random.normal(k1, (C, 2 * C), jnp.float32)
    gamma = 1.0 + 0.1 * jax.random.normal(k2, (2 * C,), jnp.float32)
    beta = 0.1 * jax.random.normal(k3, (2 * C,), jnp.float32)

    fwd = jax.jit(upsample_forward)
    out = jax.block_until_ready(fwd(x, w, gamma, beta))

    ref = reference_forward(x, w, gamma, beta)
    assert out.shape == (B, T, D, 2 * H, 2 * W, C // 2), out.shape
    err = float(jnp.max(jnp.abs(out - ref)))
    assert err < 2e-3, f"max abs error too large: {err}"

    print("KERNEL_OK")
</pallas_src>

<mosaic_0001>
module attributes {stable_mosaic.version = 11 : i64} {
  func.func @_upsample_kernel(%arg0: i32, %arg1: memref<512x64xf32, #tpu.memory_space<vmem>>, %arg2: memref<64x128xf32, #tpu.memory_space<vmem>>, %arg3: memref<1x128xf32, #tpu.memory_space<vmem>>, %arg4: memref<1x128xf32, #tpu.memory_space<vmem>>, %arg5: memref<512x128xf32, #tpu.memory_space<vmem>>) attributes {dimension_semantics = [#tpu.dimension_semantics<parallel>], iteration_bounds = array<i64: 1>, scalar_prefetch = 0 : i64, scratch_operands = 0 : i64, tpu.core_type = #tpu.core_type<tc>, window_params = [{transform_indices = @transform_0, window_bounds = array<i64: 512, 64>}, {pipeline_mode = #tpu.pipeline_mode<synchronous>, transform_indices = @transform_1, window_bounds = array<i64: 64, 128>}, {pipeline_mode = #tpu.pipeline_mode<synchronous>, transform_indices = @transform_2, window_bounds = array<i64: 1, 128>}, {pipeline_mode = #tpu.pipeline_mode<synchronous>, transform_indices = @transform_3, window_bounds = array<i64: 1, 128>}, {transform_indices = @transform_4, window_bounds = array<i64: 512, 128>}]} {
    %c0 = arith.constant 0 : index
    %c0_0 = arith.constant 0 : index
    %0 = vector.load %arg1[%c0, %c0_0] : memref<512x64xf32, #tpu.memory_space<vmem>>, vector<512x64xf32>
    %c0_1 = arith.constant 0 : index
    %c0_2 = arith.constant 0 : index
    %1 = vector.load %arg2[%c0_1, %c0_2] : memref<64x128xf32, #tpu.memory_space<vmem>>, vector<64x128xf32>
    %cst = arith.constant dense<0.000000e+00> : vector<512x128xf32>
    %2 = tpu.matmul %0, %1, %cst {dimension_numbers = #tpu.dot_dimension_numbers<[1], [0], [0], [1], [0, 0, 1, 1], [], []>} : vector<512x64xf32>, vector<64x128xf32>, vector<512x128xf32> -> vector<512x128xf32>
    %cst_3 = arith.constant dense<0.000000e+00> : vector<512xf32>
    %3 = vector.multi_reduction <add>, %2, %cst_3 [1] : vector<512x128xf32> to vector<512xf32>
    %4 = vector.shape_cast %3 : vector<512xf32> to vector<512x1xf32>
    %cst_4 = arith.constant 1.280000e+02 : f32
    %5 = vector.broadcast %cst_4 : f32 to vector<512x1xf32>
    %6 = arith.divf %4, %5 : vector<512x1xf32>
    %7 = vector.broadcast %6 : vector<512x1xf32> to vector<512x128xf32>
    %8 = arith.subf %2, %7 : vector<512x128xf32>
    %9 = vector.broadcast %6 : vector<512x1xf32> to vector<512x128xf32>
    %10 = arith.subf %2, %9 : vector<512x128xf32>
    %11 = arith.mulf %8, %10 : vector<512x128xf32>
    %cst_5 = arith.constant dense<0.000000e+00> : vector<512xf32>
    %12 = vector.multi_reduction <add>, %11, %cst_5 [1] : vector<512x128xf32> to vector<512xf32>
    %13 = vector.shape_cast %12 : vector<512xf32> to vector<512x1xf32>
    %cst_6 = arith.constant 1.280000e+02 : f32
    %14 = vector.broadcast %cst_6 : f32 to vector<512x1xf32>
    %15 = arith.divf %13, %14 : vector<512x1xf32>
    %16 = vector.broadcast %6 : vector<512x1xf32> to vector<512x128xf32>
    %17 = arith.subf %2, %16 : vector<512x128xf32>
    %cst_7 = arith.constant 9.99999974E-6 : f32
    %18 = vector.broadcast %cst_7 : f32 to vector<512x1xf32>
    %19 = arith.addf %15, %18 : vector<512x1xf32>
    %20 = math.rsqrt %19 : vector<512x1xf32>
    %21 = vector.broadcast %20 : vector<512x1xf32> to vector<512x128xf32>
    %22 = arith.mulf %17, %21 : vector<512x128xf32>
    %c0_8 = arith.constant 0 : index
    %c0_9 = arith.constant 0 : index
    %23 = vector.load %arg3[%c0_8, %c0_9] : memref<1x128xf32, #tpu.memory_space<vmem>>, vector<1x128xf32>
    %24 = vector.broadcast %23 : vector<1x128xf32> to vector<512x128xf32>
    %25 = arith.mulf %22, %24 : vector<512x128xf32>
    %c0_10 = arith.constant 0 : index
    %c0_11 = arith.constant 0 : index
    %26 = vector.load %arg4[%c0_10, %c0_11] : memref<1x128xf32, #tpu.memory_space<vmem>>, vector<1x128xf32>
    %27 = vector.broadcast %26 : vector<1x128xf32> to vector<512x128xf32>
    %28 = arith.addf %25, %27 : vector<512x128xf32>
    %c0_12 = arith.constant 0 : index
    %c0_13 = arith.constant 0 : index
    %29 = vector.load %arg5[%c0_12, %c0_13] : memref<512x128xf32, #tpu.memory_space<vmem>>, vector<512x128xf32>
    tpu.vector_store %arg5[%c0_12, %c0_13], %28 {strides = array<i32>} : memref<512x128xf32, #tpu.memory_space<vmem>>, vector<512x128xf32>,
    return
  }
  func.func @transform_0(%arg0: i32) -> (i32, i32) {
    %c0_i32 = arith.constant 0 : i32
    %c0_i32_0 = arith.constant 0 : i32
    return %arg0, %c0_i32 : i32, i32
  }
  func.func @transform_1(%arg0: i32) -> (i32, i32) {
    %c0_i32 = arith.constant 0 : i32
    %c0_i32_0 = arith.constant 0 : i32
    %c0_i32_1 = arith.constant 0 : i32
    return %c0_i32, %c0_i32_0 : i32, i32
  }
  func.func @transform_2(%arg0: i32) -> (i32, i32) {
    %c0_i32 = arith.constant 0 : i32
    %c0_i32_0 = arith.constant 0 : i32
    %c0_i32_1 = arith.constant 0 : i32
    return %c0_i32, %c0_i32_0 : i32, i32
  }
  func.func @transform_3(%arg0: i32) -> (i32, i32) {
    %c0_i32 = arith.constant 0 : i32
    %c0_i32_0 = arith.constant 0 : i32
    %c0_i32_1 = arith.constant 0 : i32
    return %c0_i32, %c0_i32_0 : i32, i32
  }
  func.func @transform_4(%arg0: i32) -> (i32, i32) {
    %c0_i32 = arith.constant 0 : i32
    %c0_i32_0 = arith.constant 0 : i32
    return %arg0, %c0_i32 : i32, i32
  }
}

</mosaic_0001>

<bundles_post_ra>
// kernel: upsample_forward.1
= control target key start
LH: loop header
LB: loop body
LE: loop exit
PB: predicated region body
PF: predicated region fallthrough
CT: control target
= control target key end

     0   :  { %9 = vsyncpa [#allocation3], 0  ;;  %s3082_s0 = inlined_call_operand.hbm [shape: f32[512,64], index: 0, kind: input, shape index: {}]   ;;  %s3083_s1 = inlined_call_operand.hbm [shape: f32[64,128], index: 1, kind: input, shape index: {}]   ;;  %s3084_s2 = inlined_call_operand.vmem [shape: f32[1,128], index: 2, kind: input, shape index: {}]   ;;  %s3085_s3 = inlined_call_operand.vmem [shape: f32[1,128], index: 3, kind: input, shape index: {}]   ;;  %s3086_s4 = inlined_call_operand.vmem [shape: f32[512,128], index: 4, kind: output, shape index: {}]  }
   0x1   :  { %10 = vsyncpa [#allocation5], 0  ;;  %s2068_s15 = smov [#allocation2]   ;;  %s2020_s19 = scalar_lea.hbm %s3082_s0, 8192 }
   0x2   :  { %s16_s16 = sshll.u32 %s2068_s15, 4  ;;  %p2021_p0 = scmp.ne.s32.totalorder %s3082_s0, %s2020_s19  ;;  %s17_s16 = int_to_ptr.vmem [resolvable:$true] %s16_s16 }
   0x3   :  { %p2024_p1 = scmp.lt.u32.totalorder %s2020_s19, %s3082_s0 }
   0x5   :  { %p2026_p2 = pnand %p2024_p1, %p2021_p0 }
   0x7   :  { %2029 = shalt.err (!%p2026_p2)
}
   0x8   :  { %s2030_s24 = scalar_lea.vmem %s17_s16, 8192  ;;  %p2035_p4 = scmp.lt.s32.totalorder %s17_s16, %s17_s16 }
   0x9   :  { %p2031_p3 = scmp.ne.s32.totalorder %s17_s16, %s2030_s24  ;;  %p2036_p5 = scmp.lt.s32.totalorder %s2030_s24, %s2030_s24 }
   0xb   :  { %p2037_p6 = por %p2036_p5, %p2035_p4 }
   0xd   :  { %p2038_p7 = pnand %p2037_p6, %p2031_p3 }
   0xf   :  { %2041 = shalt.err (!%p2038_p7)
}
  0x10   :  { %s2069_s25 = smov 128   ;;  %s2070_s26 = smov 8  }
  0x11   :  { %22 = dma.hbm_to_vmem [thread:$0]  %s3082_s0, 8192, %s17_s16, [#allocation3], %s2069_s25, %s2069_s25, %s2070_s26  }
  0x12   :  { %s2071_s29 = smov [#allocation4]   ;;  %s2042_s7 = scalar_lea.hbm %s3083_s1, 1024 }
  0x13   :  { %s28_s30 = sshll.u32 %s2071_s29, 4  ;;  %p2043_p8 = scmp.ne.s32.totalorder %s3083_s1, %s2042_s7  ;;  %s29_s30 = int_to_ptr.vmem [resolvable:$true] %s28_s30 }
  0x14   :  { %p2046_p9 = scmp.lt.u32.totalorder %s2042_s7, %s3083_s1 }
  0x16   :  { %p2048_p10 = pnand %p2046_p9, %p2043_p8 }
  0x18   :  { %2051 = shalt.err (!%p2048_p10)
}
  0x19   :  { %s2052_s12 = scalar_lea.vmem %s29_s30, 1024  ;;  %p2057_p12 = scmp.lt.s32.totalorder %s29_s30, %s29_s30 }
  0x1a   :  { %p2053_p11 = scmp.ne.s32.totalorder %s29_s30, %s2052_s12  ;;  %p2058_p13 = scmp.lt.s32.totalorder %s2052_s12, %s2052_s12 }
  0x1c   :  { %p2059_p0 = por %p2058_p13, %p2057_p12 }
  0x1e   :  { %p2060_p1 = pnand %p2059_p0, %p2053_p11 }
  0x20   :  { %2063 = shalt.err (!%p2060_p1)
}
  0x21   :  { %34 = dma.hbm_to_vmem [thread:$0]  %s3083_s1, 1024, %s29_s30, [#allocation5], %s2069_s25, %s2069_s25, %s2070_s26  }
  0x22   :  { %2064 = dma.done.wait [#allocation3], 8192  }
  0x23   :  { %2065 = vsyncadd [#allocation3], 4294959104 }
  0x24   :  { %2066 = dma.done.wait [#allocation5], 1024  }
  0x25   :  { %2067 = vsyncadd [#allocation5], 4294966272  ;;  %v109_v0 = vld [vmem:[#allocation4] sm:$0xff]  ;;  %v110_v1 = vld [vmem:[#allocation4 + $0x8] sm:$0xff]  ;;  %vm117_vm0 = vcmask 523264  }
  0x26   :  { %v111_v2 = vld [vmem:[#allocation4 + $0x10] sm:$0xff]  ;;  %v1862_v3 = vpack.c.bf16 %v110_v1, %v109_v0  ;;  %v112_v4 = vld [vmem:[#allocation4 + $0x18] sm:$0xff]  ;;  %v113_v6 = vld [vmem:[#allocation4 + $0x20] sm:$0xff] }
  0x27   :  { %v1866_v5 = vpack.c.bf16 %v112_v4, %v111_v2  ;;  %v114_v7 = vld [vmem:[#allocation4 + $0x28] sm:$0xff]  ;;  %v45_v8 = vld [vmem:[#allocation2] sm:$0xff]  ;;  %v115_v11 = vld [vmem:[#allocation4 + $0x30] sm:$0xff] }
  0x28   :  { %1863 = vmatprep.subr.bf16.mxu0 %v1862_v3  ;;  %1878 = vmatprep.subr.bf16.mxu1 %v1862_v3  ;;  %v77_v9 = vld [vmem:[#allocation2 + $0x100] sm:$0xff]  ;;  %v1870_v10 = vpack.c.bf16 %v114_v7, %v113_v6  ;;  %v116_v12 = vld [vmem:[#allocation4 + $0x38] sm:$0xff]  ;;  %v46_v14 = vld [vmem:[#allocation2 + $0x8] sm:$0xff] }
  0x29   :  { %1865 = vmatpush3.bf16.msra.mxu0 %v1862_v3  ;;  %1882 = vmatpush3.bf16.msra.mxu1 %v1862_v3  ;;  %v1874_v13 = vpack.c.bf16 %v116_v12, %v115_v11  ;;  %v78_v15 = vld [vmem:[#allocation2 + $0x108] sm:$0xff]  ;;  %v47_v16 = vld [vmem:[#allocation2 + $0x10] sm:$0xff]  ;;  %v48_v18 = vld [vmem:[#allocation2 + $0x18] sm:$0xff] }
  0x2a   :  { %1867 = vmatprep.subr.bf16.mxu0 %v1866_v5  ;;  %1879 = vmatprep.subr.bf16.mxu1 %v1866_v5  ;;  %v79_v17 = vld [vmem:[#allocation2 + $0x110] sm:$0xff]  ;;  %v80_v19 = vld [vmem:[#allocation2 + $0x118] sm:$0xff]  ;;  %v49_v20 = vld [vmem:[#allocation2 + $0x20] sm:$0xff] }
  0x2b   :  { %1766 = vmatprep.mubr.msk.f32.mxu0 %vm117_vm0, %v45_v8  ;;  %1814 = vmatprep.mubr.msk.f32.mxu1 %vm117_vm0, %v77_v9  ;;  %v81_v21 = vld [vmem:[#allocation2 + $0x120] sm:$0xff]  ;;  %v50_v22 = vld [vmem:[#allocation2 + $0x28] sm:$0xff]  ;;  %v51_v24 = vld [vmem:[#allocation2 + $0x30] sm:$0xff] }
  0x2c   :  { %v82_v23 = vld [vmem:[#allocation2 + $0x128] sm:$0xff]  ;;  %v83_v25 = vld [vmem:[#allocation2 + $0x130] sm:$0xff]  ;;  %v52_v26 = vld [vmem:[#allocation2 + $0x38] sm:$0xff] }
  0x2d   :  { %1869 = vmatpush3.bf16.msra.mxu0 %v1866_v5  ;;  %1883 = vmatpush3.bf16.msra.mxu1 %v1866_v5  ;;  %v84_v27 = vld [vmem:[#allocation2 + $0x138] sm:$0xff]  ;;  %v53_v28 = vld [vmem:[#allocation2 + $0x40] sm:$0xff]  ;;  %v54_v30 = vld [vmem:[#allocation2 + $0x48] sm:$0xff] }
  0x2e   :  { %1871 = vmatprep.subr.bf16.mxu0 %v1870_v10  ;;  %1880 = vmatprep.subr.bf16.mxu1 %v1870_v10  ;;  %v85_v29 = vld [vmem:[#allocation2 + $0x140] sm:$0xff]  ;;  %v86_v31 = vld [vmem:[#allocation2 + $0x148] sm:$0xff]  ;;  %v55_v32 = vld [vmem:[#allocation2 + $0x50] sm:$0xff] }
  0x2f   :  { %v87_v33 = vld [vmem:[#allocation2 + $0x150] sm:$0xff]  ;;  %v56_v34 = vld [vmem:[#allocation2 + $0x58] sm:$0xff]  ;;  %v57_v36 = vld [vmem:[#allocation2 + $0x60] sm:$0xff] }
  0x30   :  { %v88_v35 = vld [vmem:[#allocation2 + $0x158] sm:$0xff]  ;;  %v89_v37 = vld [vmem:[#allocation2 + $0x160] sm:$0xff]  ;;  %v58_v38 = vld [vmem:[#allocation2 + $0x68] sm:$0xff] }
  0x31   :  { %1873 = vmatpush3.bf16.msra.mxu0 %v1870_v10  ;;  %1884 = vmatpush3.bf16.msra.mxu1 %v1870_v10  ;;  %v90_v39 = vld [vmem:[#allocation2 + $0x168] sm:$0xff]  ;;  %v59_v40 = vld [vmem:[#allocation2 + $0x70] sm:$0xff]  ;;  %v60_v42 = vld [vmem:[#allocation2 + $0x78] sm:$0xff] }
  0x32   :  { %1875 = vmatprep.subr.bf16.mxu0 %v1874_v13  ;;  %1881 = vmatprep.subr.bf16.mxu1 %v1874_v13  ;;  %v91_v41 = vld [vmem:[#allocation2 + $0x170] sm:$0xff]  ;;  %v92_v43 = vld [vmem:[#allocation2 + $0x178] sm:$0xff]  ;;  %v61_v44 = vld [vmem:[#allocation2 + $0x80] sm:$0xff] }
  0x33   :  { %v93_v45 = vld [vmem:[#allocation2 + $0x180] sm:$0xff]  ;;  %v62_v46 = vld [vmem:[#allocation2 + $0x88] sm:$0xff]  ;;  %v63_v48 = vld [vmem:[#allocation2 + $0x90] sm:$0xff] }
  0x34   :  { %v94_v47 = vld [vmem:[#allocation2 + $0x188] sm:$0xff]  ;;  %v95_v49 = vld [vmem:[#allocation2 + $0x190] sm:$0xff]  ;;  %v64_v50 = vld [vmem:[#allocation2 + $0x98] sm:$0xff] }
  0x35   :  { %1877 = vmatpush3.bf16.msra.mxu0 %v1874_v13  ;;  %1885 = vmatpush3.bf16.msra.mxu1 %v1874_v13  ;;  %v96_v51 = vld [vmem:[#allocation2 + $0x198] sm:$0xff]  ;;  %v65_v52 = vld [vmem:[#allocation2 + $0xa0] sm:$0xff]  ;;  %v66_v54 = vld [vmem:[#allocation2 + $0xa8] sm:$0xff] }
  0x36   :  { %v97_v53 = vld [vmem:[#allocation2 + $0x1a0] sm:$0xff]  ;;  %v98_v55 = vld [vmem:[#allocation2 + $0x1a8] sm:$0xff]  ;;  %v67_v56 = vld [vmem:[#allocation2 + $0xb0] sm:$0xff] }
  0x37   :  { %v99_v57 = vld [vmem:[#allocation2 + $0x1b0] sm:$0xff]  ;;  %v68_v58 = vld [vmem:[#allocation2 + $0xb8] sm:$0xff]  ;;  %v69_v60 = vld [vmem:[#allocation2 + $0xc0] sm:$0xff] }
  0x38   :  { %1767 = vmatmul.mubr.msk.f32.vlgmr.msra.gmra.mrb[0].mxu0 %vm117_vm0, %v46_v14  ;;  %1815 = vmatmul.mubr.msk.f32.vlgmr.msra.gmra.mrb[0].mxu1 %vm117_vm0, %v78_v15  ;;  %v100_v59 = vld [vmem:[#allocation2 + $0x1b8] sm:$0xff]  ;;  %v101_v61 = vld [vmem:[#allocation2 + $0x1c0] sm:$0xff]  ;;  %v70_v62 = vld [vmem:[#allocation2 + $0xc8] sm:$0xff] }
  0x39   :  { %1769 = vmatprep.mubr.msk.f32.mxu0 %vm117_vm0, %v47_v16  ;;  %1817 = vmatprep.mubr.msk.f32.mxu1 %vm117_vm0, %v79_v17  ;;  %v102_v63 = vld [vmem:[#allocation2 + $0x1c8] sm:$0xff]  ;;  %v71_v0 = vld [vmem:[#allocation2 + $0xd0] sm:$0xff]  ;;  %v72_v2 = vld [vmem:[#allocation2 + $0xd8] sm:$0xff] }
  0x3a   :  { %v103_v1 = vld [vmem:[#allocation2 + $0x1d0] sm:$0xff]  ;;  %v104_v3 = vld [vmem:[#allocation2 + $0x1d8] sm:$0xff]  ;;  %v73_v4 = vld [vmem:[#allocation2 + $0xe0] sm:$0xff] }
  0x3b   :  { %v105_v5 = vld [vmem:[#allocation2 + $0x1e0] sm:$0xff]  ;;  %v74_v6 = vld [vmem:[#allocation2 + $0xe8] sm:$0xff]  ;;  %v75_v8 = vld [vmem:[#allocation2 + $0xf0] sm:$0xff] }
  0x3c   :  { %1770 = vmatmul.mubr.msk.f32.gmra.mrb[2].mxu0 %vm117_vm0, %v48_v18  ;;  %1818 = vmatmul.mubr.msk.f32.gmra.mrb[2].mxu1 %vm117_vm0, %v80_v19  ;;  %v106_v7 = vld [vmem:[#allocation2 + $0x1e8] sm:$0xff]  ;;  %v107_v9 = vld [vmem:[#allocation2 + $0x1f0] sm:$0xff]  ;;  %v76_v10 = vld [vmem:[#allocation2 + $0xf8] sm:$0xff] }
  0x3d   :  { %1772 = vmatprep.mubr.msk.f32.mxu0 %vm117_vm0, %v49_v20  ;;  %1820 = vmatprep.mubr.msk.f32.mxu1 %vm117_vm0, %v81_v21  ;;  %v108_v11 = vld [vmem:[#allocation2 + $0x1f8] sm:$0xff] }
  0x40   :  { %1773 = vmatmul.mubr.msk.f32.gmra.mrb[4].mxu0 %vm117_vm0, %v50_v22  ;;  %1821 = vmatmul.mubr.msk.f32.gmra.mrb[4].mxu1 %vm117_vm0, %v82_v23 }
  0x41   :  { %1775 = vmatprep.mubr.msk.f32.mxu0 %vm117_vm0, %v51_v24  ;;  %1823 = vmatprep.mubr.msk.f32.mxu1 %vm117_vm0, %v83_v25 }
  0x44   :  { %1776 = vmatmul.mubr.msk.f32.gmra.mrb[6].mxu0 %vm117_vm0, %v52_v26  ;;  %1824 = vmatmul.mubr.msk.f32.gmra.mrb[6].mxu1 %vm117_vm0, %v84_v27 }
  0x45   :  { %1778 = vmatprep.mubr.msk.f32.mxu0 %vm117_vm0, %v53_v28  ;;  %1826 = vmatprep.mubr.msk.f32.mxu1 %vm117_vm0, %v85_v29 }
  0x48   :  { %1779 = vmatmul.mubr.msk.f32.gmra.mrb[8].mxu0 %vm117_vm0, %v54_v30  ;;  %1827 = vmatmul.mubr.msk.f32.gmra.mrb[8].mxu1 %vm117_vm0, %v86_v31 }
  0x49   :  { %1781 = vmatprep.mubr.msk.f32.mxu0 %vm117_vm0, %v55_v32  ;;  %1829 = vmatprep.mubr.msk.f32.mxu1 %vm117_vm0, %v87_v33 }
  0x4c   :  { %1782 = vmatmul.mubr.msk.f32.gmra.mrb[10].mxu0 %vm117_vm0, %v56_v34  ;;  %1830 = vmatmul.mubr.msk.f32.gmra.mrb[10].mxu1 %vm117_vm0, %v88_v35 }
  0x4d   :  { %1784 = vmatprep.mubr.msk.f32.mxu0 %vm117_vm0, %v57_v36  ;;  %1832 = vmatprep.mubr.msk.f32.mxu1 %vm117_vm0, %v89_v37 }
  0x50   :  { %1785 = vmatmul.mubr.msk.f32.gmra.mrb[12].mxu0 %vm117_vm0, %v58_v38  ;;  %1833 = vmatmul.mubr.msk.f32.gmra.mrb[12].mxu1 %vm117_vm0, %v90_v39 }
  0x51   :  { %1787 = vmatprep.mubr.msk.f32.mxu0 %vm117_vm0, %v59_v40  ;;  %1835 = vmatprep.mubr.msk.f32.mxu1 %vm117_vm0, %v91_v41 }
  0x54   :  { %1788 = vmatmul.mubr.msk.f32.gmra.mrb[14].mxu0 %vm117_vm0, %v60_v42  ;;  %1836 = vmatmul.mubr.msk.f32.gmra.mrb[14].mxu1 %vm117_vm0, %v92_v43 }
  0x55   :  { %1790 = vmatprep.mubr.msk.f32.mxu0 %vm117_vm0, %v61_v44  ;;  %1838 = vmatprep.mubr.msk.f32.mxu1 %vm117_vm0, %v93_v45 }
  0x58   :  { %1791 = vmatmul.mubr.msk.f32.gmra.mrb[16].mxu0 %vm117_vm0, %v62_v46  ;;  %1839 = vmatmul.mubr.msk.f32.gmra.mrb[16].mxu1 %vm117_vm0, %v94_v47 }
  0x59   :  { %1793 = vmatprep.mubr.msk.f32.mxu0 %vm117_vm0, %v63_v48  ;;  %1841 = vmatprep.mubr.msk.f32.mxu1 %vm117_vm0, %v95_v49 }
  0x5c   :  { %1794 = vmatmul.mubr.msk.f32.gmra.mrb[18].mxu0 %vm117_vm0, %v64_v50  ;;  %1842 = vmatmul.mubr.msk.f32.gmra.mrb[18].mxu1 %vm117_vm0, %v96_v51 }
  0x5d   :  { %1796 = vmatprep.mubr.msk.f32.mxu0 %vm117_vm0, %v65_v52  ;;  %1844 = vmatprep.mubr.msk.f32.mxu1 %vm117_vm0, %v97_v53 }
  0x60   :  { %1797 = vmatmul.mubr.msk.f32.gmra.mrb[20].mxu0 %vm117_vm0, %v66_v54  ;;  %1845 = vmatmul.mubr.msk.f32.gmra.mrb[20].mxu1 %vm117_vm0, %v98_v55 }
  0x61   :  { %1799 = vmatprep.mubr.msk.f32.mxu0 %vm117_vm0, %v67_v56  ;;  %1847 = vmatprep.mubr.msk.f32.mxu1 %vm117_vm0, %v99_v57 }
  0x64   :  { %1800 = vmatmul.mubr.msk.f32.gmra.mrb[22].mxu0 %vm117_vm0, %v68_v58  ;;  %1848 = vmatmul.mubr.msk.f32.gmra.mrb[22].mxu1 %vm117_vm0, %v100_v59 }
  0x65   :  { %1802 = vmatprep.mubr.msk.f32.mxu0 %vm117_vm0, %v69_v60  ;;  %1850 = vmatprep.mubr.msk.f32.mxu1 %vm117_vm0, %v101_v61 }
  0x68   :  { %1803 = vmatmul.mubr.msk.f32.gmra.mrb[24].mxu0 %vm117_vm0, %v70_v62  ;;  %1851 = vmatmul.mubr.msk.f32.gmra.mrb[24].mxu1 %vm117_vm0, %v102_v63 }
  0x69   :  { %1805 = vmatprep.mubr.msk.f32.mxu0 %vm117_vm0, %v71_v0  ;;  %1853 = vmatprep.mubr.msk.f32.mxu1 %vm117_vm0, %v103_v1 }
  0x6c   :  { %1806 = vmatmul.mubr.msk.f32.gmra.mrb[26].mxu0 %vm117_vm0, %v72_v2  ;;  %1854 = vmatmul.mubr.msk.f32.gmra.mrb[26].mxu1 %vm117_vm0, %v104_v3 }
  0x6d   :  { %1808 = vmatprep.mubr.msk.f32.mxu0 %vm117_vm0, %v73_v4  ;;  %1856 = vmatprep.mubr.msk.f32.mxu1 %vm117_vm0, %v105_v5 }
  0x70   :  { %1809 = vmatmul.mubr.msk.f32.gmra.mrb[28].mxu0 %vm117_vm0, %v74_v6  ;;  %1857 = vmatmul.mubr.msk.f32.gmra.mrb[28].mxu1 %vm117_vm0, %v106_v7 }
  0x71   :  { %1811 = vmatprep.mubr.msk.f32.mxu0 %vm117_vm0, %v75_v8  ;;  %1859 = vmatprep.mubr.msk.f32.mxu1 %vm117_vm0, %v107_v9 }
  0x74   :  { %1812 = vmatmul.mubr.msk.f32.gmra.mrb[30].mxu0 %vm117_vm0, %v76_v10  ;;  %1860 = vmatmul.mubr.msk.f32.gmra.mrb[30].mxu1 %vm117_vm0, %v108_v11 }
 0x10b   :  { %v2185_v12 = vpop.f32.mrb[0].mxu0  ;;  %v2187_v13 = vpop.f32.mrb[0].mxu1 }
 0x10c   :  { %761 = vadd.xlane.f32.xlu1 %v2187_v13  ;;  %v2190_v14 = vpop.f32.mrb[1].mxu1  ;;  %697 = vadd.xlane.f32.xlu0 %v2185_v12  ;;  %v2193_v15 = vpop.f32.mrb[1].mxu0 }
 0x10f   :  { %v2195_v16 = vpop.f32.mrb[2].mxu0  ;;  %v2197_v17 = vpop.f32.mrb[2].mxu1 }
 0x110   :  { %695 = vadd.xlane.f32.xlu0 %v2193_v15  ;;  %701 = vadd.xlane.f32.xlu1 %v2195_v16  ;;  %v2201_v18 = vpop.f32.mrb[3].mxu0  ;;  %v2203_v19 = vpop.f32.mrb[3].mxu1 }
 0x113   :  { %v2205_v20 = vpop.f32.mrb[4].mxu0  ;;  %v2207_v21 = vpop.f32.mrb[4].mxu1 }
 0x114   :  { %759 = vadd.xlane.f32.xlu0 %v2190_v14  ;;  %765 = vadd.xlane.f32.xlu1 %v2197_v17  ;;  %v2211_v22 = vpop.f32.mrb[5].mxu0  ;;  %v2213_v23 = vpop.f32.mrb[5].mxu1 }
 0x117   :  { %v2215_v24 = vpop.f32.mrb[6].mxu0  ;;  %v2217_v25 = vpop.f32.mrb[6].mxu1 }
 0x118   :  { %763 = vadd.xlane.f32.xlu0 %v2203_v19  ;;  %699 = vadd.xlane.f32.xlu1 %v2201_v18  ;;  %v2221_v26 = vpop.f32.mrb[7].mxu0  ;;  %v2223_v27 = vpop.f32.mrb[7].mxu1 }
 0x11b   :  { %v2225_v28 = vpop.f32.mrb[8].mxu0  ;;  %v2227_v29 = vpop.f32.mrb[8].mxu1 }
 0x11c   :  { %705 = vadd.xlane.f32.xlu1 %v2205_v20  ;;  %703 = vadd.xlane.f32.xlu0 %v2211_v22  ;;  %v2231_v30 = vpop.f32.mrb[9].mxu0  ;;  %v2233_v31 = vpop.f32.mrb[9].mxu1 }
 0x11f   :  { %v2235_v32 = vpop.f32.mrb[10].mxu0  ;;  %v2237_v33 = vpop.f32.mrb[10].mxu1 }
 0x120   :  { %769 = vadd.xlane.f32.xlu1 %v2207_v21  ;;  %767 = vadd.xlane.f32.xlu0 %v2213_v23  ;;  %v2241_v34 = vpop.f32.mrb[11].mxu0  ;;  %v2243_v35 = vpop.f32.mrb[11].mxu1 }
 0x123   :  { %v2245_v36 = vpop.f32.mrb[12].mxu0  ;;  %v2247_v37 = vpop.f32.mrb[12].mxu1 }
 0x124   :  { %709 = vadd.xlane.f32.xlu1 %v2215_v24  ;;  %707 = vadd.xlane.f32.xlu0 %v2221_v26  ;;  %v2251_v38 = vpop.f32.mrb[13].mxu0  ;;  %v2253_v39 = vpop.f32.mrb[13].mxu1 }
 0x127   :  { %v2255_v40 = vpop.f32.mrb[14].mxu0  ;;  %v2257_v41 = vpop.f32.mrb[14].mxu1 }
 0x128   :  { %773 = vadd.xlane.f32.xlu1 %v2217_v25  ;;  %771 = vadd.xlane.f32.xlu0 %v2223_v27  ;;  %v2261_v42 = vpop.f32.mrb[15].mxu0  ;;  %v2263_v43 = vpop.f32.mrb[15].mxu1 }
 0x12b   :  { %v2265_v44 = vpop.f32.mrb[16].mxu0  ;;  %v2267_v45 = vpop.f32.mrb[16].mxu1 }
 0x12c   :  { %713 = vadd.xlane.f32.xlu1 %v2225_v28  ;;  %711 = vadd.xlane.f32.xlu0 %v2231_v30  ;;  %v2271_v46 = vpop.f32.mrb[17].mxu0  ;;  %v2273_v47 = vpop.f32.mrb[17].mxu1 }
 0x12f   :  { %v2275_v48 = vpop.f32.mrb[18].mxu0  ;;  %v2277_v49 = vpop.f32.mrb[18].mxu1 }
 0x130   :  { %777 = vadd.xlane.f32.xlu1 %v2227_v29  ;;  %775 = vadd.xlane.f32.xlu0 %v2233_v31  ;;  %v2281_v50 = vpop.f32.mrb[19].mxu0  ;;  %v2283_v51 = vpop.f32.mrb[19].mxu1 }
 0x133   :  { %v2285_v52 = vpop.f32.mrb[20].mxu0  ;;  %v2287_v53 = vpop.f32.mrb[20].mxu1 }
 0x134   :  { %717 = vadd.xlane.f32.xlu1 %v2235_v32  ;;  %715 = vadd.xlane.f32.xlu0 %v2241_v34  ;;  %v2291_v54 = vpop.f32.mrb[21].mxu0  ;;  %v2293_v55 = vpop.f32.mrb[21].mxu1 }
 0x137   :  { %v2295_v56 = vpop.f32.mrb[22].mxu0  ;;  %v2297_v57 = vpop.f32.mrb[22].mxu1 }
 0x138   :  { %781 = vadd.xlane.f32.xlu1 %v2237_v33  ;;  %779 = vadd.xlane.f32.xlu0 %v2243_v35  ;;  %v2301_v58 = vpop.f32.mrb[23].mxu0  ;;  %v2303_v59 = vpop.f32.mrb[23].mxu1 }
 0x13b   :  { %v2305_v60 = vpop.f32.mrb[24].mxu0  ;;  %v2307_v61 = vpop.f32.mrb[24].mxu1 }
 0x13c   :  { %3119 = vst [vmem:[#allocation8_spill] sm:$0xff] %v2307_v61  ;;  %721 = vadd.xlane.f32.xlu1 %v2245_v36  ;;  %719 = vadd.xlane.f32.xlu0 %v2251_v38  ;;  %v2311_v62 = vpop.f32.mrb[25].mxu0  ;;  %v2313_v63 = vpop.f32.mrb[25].mxu1 }
 0x13d   :  { %3120 = vst [vmem:[#allocation9_spill] sm:$0xff] %v2313_v63 }
 0x13f   :  { %v2315_v0 = vpop.f32.mrb[26].mxu0  ;;  %v2317_v1 = vpop.f32.mrb[26].mxu1 }
 0x140   :  { %3121 = vst [vmem:[#allocation10_spill] sm:$0xff] %v2315_v0  ;;  %3122 = vst [vmem:[#allocation11_spill] sm:$0xff] %v2317_v1  ;;  %785 = vadd.xlane.f32.xlu1 %v2247_v37  ;;  %783 = vadd.xlane.f32.xlu0 %v2253_v39  ;;  %v2321_v2 = vpop.f32.mrb[27].mxu0  ;;  %v2323_v3 = vpop.f32.mrb[27].mxu1 }
 0x141   :  { %3123 = vst [vmem:[#allocation12_spill] sm:$0xff] %v2321_v2  ;;  %3124 = vst [vmem:[#allocation13_spill] sm:$0xff] %v2323_v3 }
 0x143   :  { %v2325_v4 = vpop.f32.mrb[28].mxu0  ;;  %v2327_v5 = vpop.f32.mrb[28].mxu1 }
 0x144   :  { %3125 = vst [vmem:[#allocation14_spill] sm:$0xff] %v2325_v4  ;;  %3126 = vst [vmem:[#allocation15_spill] sm:$0xff] %v2327_v5  ;;  %725 = vadd.xlane.f32.xlu1 %v2255_v40  ;;  %723 = vadd.xlane.f32.xlu0 %v2261_v42  ;;  %v2331_v6 = vpop.f32.mrb[29].mxu0  ;;  %v2333_v7 = vpop.f32.mrb[29].mxu1 }
 0x145   :  { %3127 = vst [vmem:[#allocation16_spill] sm:$0xff] %v2331_v6 }
 0x147   :  { %v2335_v8 = vpop.f32.mrb[30].mxu0  ;;  %v2337_v9 = vpop.f32.mrb[30].mxu1 }
 0x148   :  { %3128 = vst [vmem:[#allocation17_spill] sm:$0xff] %v2335_v8  ;;  %3129 = vst [vmem:[#allocation18_spill] sm:$0xff] %v2337_v9  ;;  %789 = vadd.xlane.f32.xlu1 %v2257_v41  ;;  %787 = vadd.xlane.f32.xlu0 %v2263_v43  ;;  %v2341_v10 = vpop.f32.mrb[31].mxu0  ;;  %v2343_v11 = vpop.f32.mrb[31].mxu1 }
 0x149   :  { %3130 = vst [vmem:[#allocation19_spill] sm:$0xff] %v2341_v10  ;;  %3131 = vst [vmem:[#allocation20_spill] sm:$0xff] %v2343_v11 }
 0x14c   :  { %729 = vadd.xlane.f32.xlu1 %v2265_v44  ;;  %727 = vadd.xlane.f32.xlu0 %v2271_v46 }
 0x150   :  { %793 = vadd.xlane.f32.xlu1 %v2267_v45  ;;  %791 = vadd.xlane.f32.xlu0 %v2273_v47 }
 0x154   :  { %733 = vadd.xlane.f32.xlu1 %v2275_v48  ;;  %731 = vadd.xlane.f32.xlu0 %v2281_v50 }
 0x158   :  { %797 = vadd.xlane.f32.xlu1 %v2277_v49  ;;  %795 = vadd.xlane.f32.xlu0 %v2283_v51 }
 0x15c   :  { %737 = vadd.xlane.f32.xlu1 %v2285_v52  ;;  %735 = vadd.xlane.f32.xlu0 %v2291_v54 }
 0x160   :  { %801 = vadd.xlane.f32.xlu1 %v2287_v53  ;;  %799 = vadd.xlane.f32.xlu0 %v2293_v55 }
 0x164   :  { %741 = vadd.xlane.f32.xlu1 %v2295_v56  ;;  %739 = vadd.xlane.f32.xlu0 %v2301_v58 }
 0x168   :  { %805 = vadd.xlane.f32.xlu1 %v2297_v57  ;;  %803 = vadd.xlane.f32.xlu0 %v2303_v59 }
 0x16c   :  { %745 = vadd.xlane.f32.xlu1 %v2305_v60  ;;  %743 = vadd.xlane.f32.xlu0 %v2311_v62 }
 0x170   :  { %809 = vadd.xlane.f32.xlu1 %v2307_v61  ;;  %807 = vadd.xlane.f32.xlu0 %v2313_v63 }
 0x174   :  { %749 = vadd.xlane.f32.xlu1 %v2315_v0  ;;  %747 = vadd.xlane.f32.xlu0 %v2321_v2 }
 0x178   :  { %813 = vadd.xlane.f32.xlu1 %v2317_v1  ;;  %811 = vadd.xlane.f32.xlu0 %v2323_v3 }
 0x17c   :  { %753 = vadd.xlane.f32.xlu1 %v2325_v4  ;;  %751 = vadd.xlane.f32.xlu0 %v2331_v6 }
 0x180   :  { %817 = vadd.xlane.f32.xlu1 %v2327_v5  ;;  %815 = vadd.xlane.f32.xlu0 %v2333_v7 }
 0x184   :  { %757 = vadd.xlane.f32.xlu1 %v2335_v8  ;;  %755 = vadd.xlane.f32.xlu0 %v2341_v10 }
 0x188   :  { %821 = vadd.xlane.f32.xlu1 %v2337_v9  ;;  %819 = vadd.xlane.f32.xlu0 %v2343_v11 }
 0x199   :  { %v762_v2 = vpop.xlane.xlu1 %761  ;;  %v698_v1 = vpop.xlane.xlu0 %697 }
 0x19a   :  { %v857_v0 = vmul.f32 0.0078125, %v762_v2  ;;  %v825_v3 = vmul.f32 0.0078125, %v698_v1 }
 0x19c   :  { %v2378_v4 = vsub.f32 %v2185_v12, %v825_v3  ;;  %v2383_v10 = vsub.f32 %v2187_v13, %v857_v0 }
 0x19d   :  { %v696_v6 = vpop.xlane.xlu0 %695  ;;  %v702_v63 = vpop.xlane.xlu1 %701 }
 0x19e   :  { %v824_v5 = vmul.f32 0.0078125, %v696_v6  ;;  %v827_v61 = vmul.f32 0.0078125, %v702_v63  ;;  %v953_v8 = vmul.f32 %v2378_v4, %v2378_v4  ;;  %v985_v63 = vmul.f32 %v2383_v10, %v2383_v10 }
 0x1a0   :  { %1018 = vadd.xlane.f32.xlu1 %v953_v8  ;;  %v2386_v11 = vsub.f32 %v2193_v15, %v824_v5  ;;  %v2389_v1 = vsub.f32 %v2195_v16, %v827_v61 }
 0x1a1   :  { %v760_v9 = vpop.xlane.xlu0 %759  ;;  %v766_v2 = vpop.xlane.xlu1 %765 }
 0x1a2   :  { %3132 = vst [vmem:[#allocation21_spill] sm:$0xff] %v2389_v1  ;;  %v856_v12 = vmul.f32 0.0078125, %v760_v9  ;;  %v859_v3 = vmul.f32 0.0078125, %v766_v2  ;;  %v952_v6 = vmul.f32 %v2386_v11, %v2386_v11  ;;  %v955_v5 = vmul.f32 %v2389_v1, %v2389_v1 }
 0x1a4   :  { %1082 = vadd.xlane.f32.xlu1 %v985_v63  ;;  %1016 = vadd.xlane.f32.xlu0 %v952_v6  ;;  %v2396_v13 = vsub.f32 %v2190_v14, %v856_v12  ;;  %v2403_v9 = vsub.f32 %v2197_v17, %v859_v3 }
 0x1a5   :  { %v764_v15 = vpop.xlane.xlu0 %763  ;;  %v700_v0 = vpop.xlane.xlu1 %699 }
 0x1a6   :  { %v858_v16 = vmul.f32 0.0078125, %v764_v15  ;;  %v826_v61 = vmul.f32 0.0078125, %v700_v0  ;;  %v984_v8 = vmul.f32 %v2396_v13, %v2396_v13  ;;  %v987_v15 = vmul.f32 %v2403_v9, %v2403_v9 }
 0x1a8   :  { %1022 = vadd.xlane.f32.xlu1 %v955_v5  ;;  %1080 = vadd.xlane.f32.xlu0 %v984_v8  ;;  %v2406_v2 = vsub.f32 %v2201_v18, %v826_v61  ;;  %v2409_v63 = vsub.f32 %v2203_v19, %v858_v16 }
 0x1a9   :  { %v706_v14 = vpop.xlane.xlu1 %705  ;;  %v704_v12 = vpop.xlane.xlu0 %703 }
 0x1aa   :  { %v829_v6 = vmul.f32 0.0078125, %v706_v14  ;;  %v828_v1 = vmul.f32 0.0078125, %v704_v12  ;;  %v954_v0 = vmul.f32 %v2406_v2, %v2406_v2  ;;  %v986_v5 = vmul.f32 %v2409_v63, %v2409_v63 }
 0x1ac   :  { %1086 = vadd.xlane.f32.xlu1 %v987_v15  ;;  %1020 = vadd.xlane.f32.xlu0 %v954_v0  ;;  %v2416_v17 = vsub.f32 %v2205_v20, %v829_v6  ;;  %v2423_v8 = vsub.f32 %v2211_v22, %v828_v1 }
 0x1ad   :  { %v770_v18 = vpop.xlane.xlu1 %769  ;;  %v768_v3 = vpop.xlane.xlu0 %767 }
 0x1ae   :  { %v861_v19 = vmul.f32 0.0078125, %v770_v18  ;;  %v860_v16 = vmul.f32 0.0078125, %v768_v3  ;;  %v957_v61 = vmul.f32 %v2416_v17, %v2416_v17  ;;  %v956_v3 = vmul.f32 %v2423_v8, %v2423_v8 }
 0x1b0   :  { %1026 = vadd.xlane.f32.xlu1 %v957_v61  ;;  %1084 = vadd.xlane.f32.xlu0 %v986_v5  ;;  %v2426_v14 = vsub.f32 %v2207_v21, %v861_v19  ;;  %v2429_v6 = vsub.f32 %v2213_v23, %v860_v16 }
 0x1b1   :  { %v710_v20 = vpop.xlane.xlu1 %709  ;;  %v708_v12 = vpop.xlane.xlu0 %707 }
 0x1b2   :  { %v831_v15 = vmul.f32 0.0078125, %v710_v20  ;;  %v830_v0 = vmul.f32 0.0078125, %v708_v12  ;;  %v989_v18 = vmul.f32 %v2426_v14, %v2426_v14  ;;  %v988_v5 = vmul.f32 %v2429_v6, %v2429_v6 }
 0x1b4   :  { %1090 = vadd.xlane.f32.xlu1 %v989_v18  ;;  %1024 = vadd.xlane.f32.xlu0 %v956_v3  ;;  %v2436_v22 = vsub.f32 %v2215_v24, %v831_v15  ;;  %v2443_v61 = vsub.f32 %v2221_v26, %v830_v0 }
 0x1b5   :  { %v774_v21 = vpop.xlane.xlu1 %773  ;;  %v772_v1 = vpop.xlane.xlu0 %771 }
 0x1b6   :  { %v863_v23 = vmul.f32 0.0078125, %v774_v21  ;;  %v862_v19 = vmul.f32 0.0078125, %v772_v1  ;;  %v959_v16 = vmul.f32 %v2436_v22, %v2436_v22  ;;  %v958_v1 = vmul.f32 %v2443_v61, %v2443_v61 }
 0x1b8   :  { %1030 = vadd.xlane.f32.xlu1 %v959_v16  ;;  %1088 = vadd.xlane.f32.xlu0 %v988_v5  ;;  %v2446_v20 = vsub.f32 %v2217_v25, %v863_v23  ;;  %v2449_v15 = vsub.f32 %v2223_v27, %v862_v19 }
 0x1b9   :  { %v714_v24 = vpop.xlane.xlu1 %713  ;;  %v712_v12 = vpop.xlane.xlu0 %711 }
 0x1ba   :  { %v833_v18 = vmul.f32 0.0078125, %v714_v24  ;;  %v832_v3 = vmul.f32 0.0078125, %v712_v12  ;;  %v991_v21 = vmul.f32 %v2446_v20, %v2446_v20  ;;  %v990_v5 = vmul.f32 %v2449_v15, %v2449_v15 }
 0x1bc   :  { %1094 = vadd.xlane.f32.xlu1 %v991_v21  ;;  %1028 = vadd.xlane.f32.xlu0 %v958_v1  ;;  %v2456_v26 = vsub.f32 %v2225_v28, %v833_v18  ;;  %v2463_v16 = vsub.f32 %v2231_v30, %v832_v3 }
 0x1bd   :  { %v778_v25 = vpop.xlane.xlu1 %777  ;;  %v776_v0 = vpop.xlane.xlu0 %775 }
 0x1be   :  { %v865_v27 = vmul.f32 0.0078125, %v778_v25  ;;  %v864_v23 = vmul.f32 0.0078125, %v776_v0  ;;  %v961_v19 = vmul.f32 %v2456_v26, %v2456_v26  ;;  %v960_v0 = vmul.f32 %v2463_v16, %v2463_v16 }
 0x1c0   :  { %1034 = vadd.xlane.f32.xlu1 %v961_v19  ;;  %1092 = vadd.xlane.f32.xlu0 %v990_v5  ;;  %v2466_v24 = vsub.f32 %v2227_v29, %v865_v27  ;;  %v2469_v18 = vsub.f32 %v2233_v31, %v864_v23 }
 0x1c1   :  { %v718_v28 = vpop.xlane.xlu1 %717  ;;  %v716_v12 = vpop.xlane.xlu0 %715 }
 0x1c2   :  { %v835_v21 = vmul.f32 0.0078125, %v718_v28  ;;  %v834_v1 = vmul.f32 0.0078125, %v716_v12  ;;  %v993_v25 = vmul.f32 %v2466_v24, %v2466_v24  ;;  %v992_v5 = vmul.f32 %v2469_v18, %v2469_v18 }
 0x1c4   :  { %1098 = vadd.xlane.f32.xlu1 %v993_v25  ;;  %1032 = vadd.xlane.f32.xlu0 %v960_v0  ;;  %v2476_v30 = vsub.f32 %v2235_v32, %v835_v21  ;;  %v2483_v19 = vsub.f32 %v2241_v34, %v834_v1 }
 0x1c5   :  { %v782_v29 = vpop.xlane.xlu1 %781  ;;  %v780_v3 = vpop.xlane.xlu0 %779 }
 0x1c6   :  { %v867_v31 = vmul.f32 0.0078125, %v782_v29  ;;  %v866_v27 = vmul.f32 0.0078125, %v780_v3  ;;  %v963_v23 = vmul.f32 %v2476_v30, %v2476_v30  ;;  %v962_v3 = vmul.f32 %v2483_v19, %v2483_v19 }
 0x1c8   :  { %1038 = vadd.xlane.f32.xlu1 %v963_v23  ;;  %1096 = vadd.xlane.f32.xlu0 %v992_v5  ;;  %v2486_v28 = vsub.f32 %v2237_v33, %v867_v31  ;;  %v2489_v21 = vsub.f32 %v2243_v35, %v866_v27 }
 0x1c9   :  { %v722_v32 = vpop.xlane.xlu1 %721  ;;  %v720_v12 = vpop.xlane.xlu0 %719 }
 0x1ca   :  { %v837_v25 = vmul.f32 0.0078125, %v722_v32  ;;  %v836_v0 = vmul.f32 0.0078125, %v720_v12  ;;  %v995_v29 = vmul.f32 %v2486_v28, %v2486_v28  ;;  %v994_v5 = vmul.f32 %v2489_v21, %v2489_v21 }
 0x1cc   :  { %1102 = vadd.xlane.f32.xlu1 %v995_v29  ;;  %1036 = vadd.xlane.f32.xlu0 %v962_v3  ;;  %v2496_v34 = vsub.f32 %v2245_v36, %v837_v25  ;;  %v2503_v23 = vsub.f32 %v2251_v38, %v836_v0 }
 0x1cd   :  { %v786_v33 = vpop.xlane.xlu1 %785  ;;  %v784_v1 = vpop.xlane.xlu0 %783 }
 0x1ce   :  { %v869_v35 = vmul.f32 0.0078125, %v786_v33  ;;  %v868_v31 = vmul.f32 0.0078125, %v784_v1  ;;  %v965_v27 = vmul.f32 %v2496_v34, %v2496_v34  ;;  %v964_v1 = vmul.f32 %v2503_v23, %v2503_v23 }
 0x1d0   :  { %1042 = vadd.xlane.f32.xlu1 %v965_v27  ;;  %1100 = vadd.xlane.f32.xlu0 %v994_v5  ;;  %v2506_v32 = vsub.f32 %v2247_v37, %v869_v35  ;;  %v2509_v25 = vsub.f32 %v2253_v39, %v868_v31 }
 0x1d1   :  { %v726_v36 = vpop.xlane.xlu1 %725  ;;  %v724_v12 = vpop.xlane.xlu0 %723 }
 0x1d2   :  { %v839_v29 = vmul.f32 0.0078125, %v726_v36  ;;  %v838_v3 = vmul.f32 0.0078125, %v724_v12  ;;  %v997_v33 = vmul.f32 %v2506_v32, %v2506_v32  ;;  %v996_v5 = vmul.f32 %v2509_v25, %v2509_v25 }
 0x1d4   :  { %1106 = vadd.xlane.f32.xlu1 %v997_v33  ;;  %1040 = vadd.xlane.f32.xlu0 %v964_v1  ;;  %v2516_v38 = vsub.f32 %v2255_v40, %v839_v29  ;;  %v2523_v27 = vsub.f32 %v2261_v42, %v838_v3 }
 0x1d5   :  { %v790_v37 = vpop.xlane.xlu1 %789  ;;  %v788_v0 = vpop.xlane.xlu0 %787 }
 0x1d6   :  { %v871_v39 = vmul.f32 0.0078125, %v790_v37  ;;  %v870_v35 = vmul.f32 0.0078125, %v788_v0  ;;  %v967_v31 = vmul.f32 %v2516_v38, %v2516_v38  ;;  %v966_v0 = vmul.f32 %v2523_v27, %v2523_v27 }
 0x1d8   :  { %v2526_v36 = vsub.f32 %v2257_v41, %v871_v39  ;;  %1046 = vadd.xlane.f32.xlu1 %v967_v31  ;;  %1104 = vadd.xlane.f32.xlu0 %v996_v5  ;;  %v2529_v40 = vsub.f32 %v2263_v43, %v870_v35 }
 0x1d9   :  { %v730_v12 = vpop.xlane.xlu1 %729  ;;  %v728_v29 = vpop.xlane.xlu0 %727 }
 0x1da   :  { %v841_v33 = vmul.f32 0.0078125, %v730_v12  ;;  %v840_v1 = vmul.f32 0.0078125, %v728_v29  ;;  %v999_v37 = vmul.f32 %v2526_v36, %v2526_v36  ;;  %v998_v43 = vmul.f32 %v2529_v40, %v2529_v40 }
 0x1dc   :  { %v2536_v42 = vsub.f32 %v2265_v44, %v841_v33  ;;  %1110 = vadd.xlane.f32.xlu1 %v999_v37  ;;  %1044 = vadd.xlane.f32.xlu0 %v966_v0  ;;  %v2541_v5 = vsub.f32 %v2271_v46, %v840_v1 }
 0x1dd   :  { %v794_v41 = vpop.xlane.xlu1 %793  ;;  %v792_v3 = vpop.xlane.xlu0 %791 }
 0x1de   :  { %v873_v39 = vmul.f32 0.0078125, %v794_v41  ;;  %v872_v35 = vmul.f32 0.0078125, %v792_v3  ;;  %v969_v31 = vmul.f32 %v2536_v42, %v2536_v42  ;;  %v968_v1 = vmul.f32 %v2541_v5, %v2541_v5 }
 0x1e0   :  { %v2546_v12 = vsub.f32 %v2267_v45, %v873_v39  ;;  %1050 = vadd.xlane.f32.xlu1 %v969_v31  ;;  %1108 = vadd.xlane.f32.xlu0 %v998_v43  ;;  %v2549_v44 = vsub.f32 %v2273_v47, %v872_v35 }
 0x1e1   :  { %v734_v29 = vpop.xlane.xlu1 %733  ;;  %v732_v33 = vpop.xlane.xlu0 %731 }
 0x1e2   :  { %v843_v37 = vmul.f32 0.0078125, %v734_v29  ;;  %v842_v0 = vmul.f32 0.0078125, %v732_v33  ;;  %v1001_v46 = vmul.f32 %v2546_v12, %v2546_v12  ;;  %v1000_v47 = vmul.f32 %v2549_v44, %v2549_v44 }
 0x1e4   :  { %v2556_v41 = vsub.f32 %v2275_v48, %v843_v37  ;;  %1114 = vadd.xlane.f32.xlu1 %v1001_v46  ;;  %1048 = vadd.xlane.f32.xlu0 %v968_v1  ;;  %v2561_v43 = vsub.f32 %v2281_v50, %v842_v0 }
 0x1e5   :  { %v798_v45 = vpop.xlane.xlu1 %797  ;;  %v796_v3 = vpop.xlane.xlu0 %795 }
 0x1e6   :  { %v875_v39 = vmul.f32 0.0078125, %v798_v45  ;;  %v874_v35 = vmul.f32 0.0078125, %v796_v3  ;;  %v971_v31 = vmul.f32 %v2556_v41, %v2556_v41  ;;  %v970_v0 = vmul.f32 %v2561_v43, %v2561_v43 }
 0x1e8   :  { %v2566_v29 = vsub.f32 %v2277_v49, %v875_v39  ;;  %1054 = vadd.xlane.f32.xlu1 %v971_v31  ;;  %1112 = vadd.xlane.f32.xlu0 %v1000_v47  ;;  %v2569_v48 = vsub.f32 %v2283_v51, %v874_v35 }
 0x1e9   :  { %v738_v33 = vpop.xlane.xlu1 %737  ;;  %v736_v37 = vpop.xlane.xlu0 %735 }
 0x1ea   :  { %v845_v46 = vmul.f32 0.0078125, %v738_v33  ;;  %v844_v1 = vmul.f32 0.0078125, %v736_v37  ;;  %v1003_v50 = vmul.f32 %v2566_v29, %v2566_v29  ;;  %v1002_v51 = vmul.f32 %v2569_v48, %v2569_v48 }
 0x1ec   :  { %v2576_v45 = vsub.f32 %v2285_v52, %v845_v46  ;;  %1118 = vadd.xlane.f32.xlu1 %v1003_v50  ;;  %1052 = vadd.xlane.f32.xlu0 %v970_v0  ;;  %v2581_v47 = vsub.f32 %v2291_v54, %v844_v1 }
 0x1ed   :  { %v802_v49 = vpop.xlane.xlu1 %801  ;;  %v800_v3 = vpop.xlane.xlu0 %799 }
 0x1ee   :  { %v877_v39 = vmul.f32 0.0078125, %v802_v49  ;;  %v876_v35 = vmul.f32 0.0078125, %v800_v3  ;;  %v973_v31 = vmul.f32 %v2576_v45, %v2576_v45  ;;  %v972_v1 = vmul.f32 %v2581_v47, %v2581_v47 }
 0x1f0   :  { %v2586_v33 = vsub.f32 %v2287_v53, %v877_v39  ;;  %1058 = vadd.xlane.f32.xlu1 %v973_v31  ;;  %1116 = vadd.xlane.f32.xlu0 %v1002_v51  ;;  %v2589_v52 = vsub.f32 %v2293_v55, %v876_v35 }
 0x1f1   :  { %v742_v37 = vpop.xlane.xlu1 %741  ;;  %v740_v46 = vpop.xlane.xlu0 %739 }
 0x1f2   :  { %v847_v50 = vmul.f32 0.0078125, %v742_v37  ;;  %v846_v0 = vmul.f32 0.0078125, %v740_v46  ;;  %v1005_v54 = vmul.f32 %v2586_v33, %v2586_v33  ;;  %v1004_v55 = vmul.f32 %v2589_v52, %v2589_v52 }
 0x1f4   :  { %v2596_v49 = vsub.f32 %v2295_v56, %v847_v50  ;;  %1122 = vadd.xlane.f32.xlu1 %v1005_v54  ;;  %1056 = vadd.xlane.f32.xlu0 %v972_v1  ;;  %v2601_v51 = vsub.f32 %v2301_v58, %v846_v0 }
 0x1f5   :  { %v806_v53 = vpop.xlane.xlu1 %805  ;;  %v804_v3 = vpop.xlane.xlu0 %803 }
 0x1f6   :  { %3133 = vst [vmem:[#allocation22_spill] sm:$0xff] %v2601_v51  ;;  %v879_v39 = vmul.f32 0.0078125, %v806_v53  ;;  %v878_v35 = vmul.f32 0.0078125, %v804_v3  ;;  %v975_v31 = vmul.f32 %v2596_v49, %v2596_v49  ;;  %v974_v0 = vmul.f32 %v2601_v51, %v2601_v51 }
 0x1f8   :  { %v2606_v37 = vsub.f32 %v2297_v57, %v879_v39  ;;  %1062 = vadd.xlane.f32.xlu1 %v975_v31  ;;  %1120 = vadd.xlane.f32.xlu0 %v1004_v55  ;;  %v2609_v56 = vsub.f32 %v2303_v59, %v878_v35 }
 0x1f9   :  { %v746_v46 = vpop.xlane.xlu1 %745  ;;  %v744_v50 = vpop.xlane.xlu0 %743 }
 0x1fa   :  { %3134 = vst [vmem:[#allocation23_spill] sm:$0xff] %v2609_v56  ;;  %v849_v54 = vmul.f32 0.0078125, %v746_v46  ;;  %v848_v1 = vmul.f32 0.0078125, %v744_v50  ;;  %v1007_v58 = vmul.f32 %v2606_v37, %v2606_v37  ;;  %v1006_v59 = vmul.f32 %v2609_v56, %v2609_v56  ;;  %v3137_v46 = vld [vmem:[#allocation8_spill] sm:$0xff] }
 0x1fc   :  { %v2616_v53 = vsub.f32 %v2305_v60, %v849_v54  ;;  %1126 = vadd.xlane.f32.xlu1 %v1007_v58  ;;  %1060 = vadd.xlane.f32.xlu0 %v974_v0  ;;  %v2621_v55 = vsub.f32 %v2311_v62, %v848_v1  ;;  %v3139_v60 = vld [vmem:[#allocation9_spill] sm:$0xff] }
 0x1fd   :  { %v810_v57 = vpop.xlane.xlu1 %809  ;;  %v808_v3 = vpop.xlane.xlu0 %807 }
 0x1fe   :  { %3135 = vst [vmem:[#allocation24_spill] sm:$0xff] %v2616_v53  ;;  %3136 = vst [vmem:[#allocation25_spill] sm:$0xff] %v2621_v55  ;;  %v881_v39 = vmul.f32 0.0078125, %v810_v57  ;;  %v880_v35 = vmul.f32 0.0078125, %v808_v3  ;;  %v977_v31 = vmul.f32 %v2616_v53, %v2616_v53  ;;  %v976_v1 = vmul.f32 %v2621_v55, %v2621_v55  ;;  %v3141_v57 = vld [vmem:[#allocation10_spill] sm:$0xff] }
 0x200   :  { %v2626_v50 = vsub.f32 %v3137_v46, %v881_v39  ;;  %1066 = vadd.xlane.f32.xlu1 %v977_v31  ;;  %1124 = vadd.xlane.f32.xlu0 %v1006_v59  ;;  %v2629_v54 = vsub.f32 %v3139_v60, %v880_v35  ;;  %v3143_v31 = vld [vmem:[#allocation12_spill] sm:$0xff] }
 0x201   :  { %v750_v58 = vpop.xlane.xlu1 %749  ;;  %v748_v0 = vpop.xlane.xlu0 %747 }
 0x202   :  { %3138 = vst [vmem:[#allocation8_spill] sm:$0xff] %v2626_v50  ;;  %3140 = vst [vmem:[#allocation9_spill] sm:$0xff] %v2629_v54  ;;  %v851_v51 = vmul.f32 0.0078125, %v750_v58  ;;  %v850_v56 = vmul.f32 0.0078125, %v748_v0  ;;  %v1009_v62 = vmul.f32 %v2626_v50, %v2626_v50  ;;  %v1008_v35 = vmul.f32 %v2629_v54, %v2629_v54  ;;  %v3145_v50 = vld [vmem:[#allocation11_spill] sm:$0xff] }
 0x204   :  { %v2636_v3 = vsub.f32 %v3141_v57, %v851_v51  ;;  %1130 = vadd.xlane.f32.xlu1 %v1009_v62  ;;  %1064 = vadd.xlane.f32.xlu0 %v976_v1  ;;  %v2641_v46 = vsub.f32 %v3143_v31, %v850_v56  ;;  %v3147_v51 = vld [vmem:[#allocation13_spill] sm:$0xff] }
 0x205   :  { %v814_v39 = vpop.xlane.xlu1 %813  ;;  %v812_v59 = vpop.xlane.xlu0 %811 }
 0x206   :  { %3142 = vst [vmem:[#allocation10_spill] sm:$0xff] %v2636_v3  ;;  %3144 = vst [vmem:[#allocation12_spill] sm:$0xff] %v2641_v46  ;;  %v883_v60 = vmul.f32 0.0078125, %v814_v39  ;;  %v882_v58 = vmul.f32 0.0078125, %v812_v59  ;;  %v979_v0 = vmul.f32 %v2636_v3, %v2636_v3  ;;  %v978_v39 = vmul.f32 %v2641_v46, %v2641_v46  ;;  %v3149_v59 = vld [vmem:[#allocation14_spill] sm:$0xff] }
 0x208   :  { %v2646_v55 = vsub.f32 %v3145_v50, %v883_v60  ;;  %1070 = vadd.xlane.f32.xlu1 %v979_v0  ;;  %1128 = vadd.xlane.f32.xlu0 %v1008_v35  ;;  %v2649_v62 = vsub.f32 %v3147_v51, %v882_v58  ;;  %v3151_v58 = vld [vmem:[#allocation16_spill] sm:$0xff] }
 0x209   :  { %v754_v1 = vpop.xlane.xlu1 %753  ;;  %v752_v57 = vpop.xlane.xlu0 %751 }
 0x20a   :  { %3146 = vst [vmem:[#allocation11_spill] sm:$0xff] %v2646_v55  ;;  %3148 = vst [vmem:[#allocation13_spill] sm:$0xff] %v2649_v62  ;;  %v853_v53 = vmul.f32 0.0078125, %v754_v1  ;;  %v852_v54 = vmul.f32 0.0078125, %v752_v57  ;;  %v1011_v56 = vmul.f32 %v2646_v55, %v2646_v55  ;;  %v1010_v60 = vmul.f32 %v2649_v62, %v2649_v62  ;;  %v3153_v55 = vld [vmem:[#allocation15_spill] sm:$0xff] }
 0x20c   :  { %v2656_v31 = vsub.f32 %v3149_v59, %v853_v53  ;;  %1134 = vadd.xlane.f32.xlu1 %v1011_v56  ;;  %1068 = vadd.xlane.f32.xlu0 %v978_v39  ;;  %v2661_v0 = vsub.f32 %v3151_v58, %v852_v54 }
 0x20d   :  { %v818_v50 = vpop.xlane.xlu1 %817  ;;  %v816_v35 = vpop.xlane.xlu0 %815 }
 0x20e   :  { %3150 = vst [vmem:[#allocation14_spill] sm:$0xff] %v2656_v31  ;;  %3152 = vst [vmem:[#allocation16_spill] sm:$0xff] %v2661_v0  ;;  %v885_v51 = vmul.f32 0.0078125, %v818_v50  ;;  %v884_v1 = vmul.f32 0.0078125, %v816_v35  ;;  %v981_v57 = vmul.f32 %v2656_v31, %v2656_v31  ;;  %v980_v50 = vmul.f32 %v2661_v0, %v2661_v0  ;;  %v3156_v35 = vld [vmem:[#allocation17_spill] sm:$0xff] }
 0x210   :  { %v2666_v46 = vsub.f32 %v3153_v55, %v885_v51  ;;  %1074 = vadd.xlane.f32.xlu1 %v981_v57  ;;  %1132 = vadd.xlane.f32.xlu0 %v1010_v60  ;;  %v2669_v53 = vsub.f32 %v2333_v7, %v884_v1  ;;  %v3158_v51 = vld [vmem:[#allocation19_spill] sm:$0xff] }
 0x211   :  { %v758_v56 = vpop.xlane.xlu1 %757  ;;  %v756_v39 = vpop.xlane.xlu0 %755 }
 0x212   :  { %3154 = vst [vmem:[#allocation15_spill] sm:$0xff] %v2666_v46  ;;  %3155 = vst [vmem:[#allocation26_spill] sm:$0xff] %v2669_v53  ;;  %v855_v59 = vmul.f32 0.0078125, %v758_v56  ;;  %v854_v62 = vmul.f32 0.0078125, %v756_v39  ;;  %v1013_v54 = vmul.f32 %v2666_v46, %v2666_v46  ;;  %v1012_v7 = vmul.f32 %v2669_v53, %v2669_v53  ;;  %v3160_v46 = vld [vmem:[#allocation18_spill] sm:$0xff] }
 0x214   :  { %v2676_v58 = vsub.f32 %v3156_v35, %v855_v59  ;;  %1138 = vadd.xlane.f32.xlu1 %v1013_v54  ;;  %1072 = vadd.xlane.f32.xlu0 %v980_v50  ;;  %v2681_v1 = vsub.f32 %v3158_v51, %v854_v62  ;;  %v3162_v59 = vld [vmem:[#allocation20_spill] sm:$0xff] }
 0x215   :  { %v822_v55 = vpop.xlane.xlu1 %821  ;;  %v820_v60 = vpop.xlane.xlu0 %819 }
 0x216   :  { %3157 = vst [vmem:[#allocation17_spill] sm:$0xff] %v2676_v58  ;;  %3159 = vst [vmem:[#allocation19_spill] sm:$0xff] %v2681_v1  ;;  %v887_v57 = vmul.f32 0.0078125, %v822_v55  ;;  %v886_v56 = vmul.f32 0.0078125, %v820_v60  ;;  %v983_v39 = vmul.f32 %v2676_v58, %v2676_v58  ;;  %v982_v62 = vmul.f32 %v2681_v1, %v2681_v1 }
 0x218   :  { %v2686_v0 = vsub.f32 %v3160_v46, %v887_v57  ;;  %1078 = vadd.xlane.f32.xlu1 %v983_v39  ;;  %1136 = vadd.xlane.f32.xlu0 %v1012_v7  ;;  %v2689_v54 = vsub.f32 %v3162_v59, %v886_v56 }
 0x21a   :  { %3161 = vst [vmem:[#allocation18_spill] sm:$0xff] %v2686_v0  ;;  %3163 = vst [vmem:[#allocation20_spill] sm:$0xff] %v2689_v54  ;;  %v1015_v50 = vmul.f32 %v2686_v0, %v2686_v0  ;;  %v1014_v35 = vmul.f32 %v2689_v54, %v2689_v54 }
 0x21c   :  { %1142 = vadd.xlane.f32.xlu1 %v1015_v50  ;;  %1076 = vadd.xlane.f32.xlu0 %v982_v62 }
 0x220   :  { %1140 = vadd.xlane.f32.xlu0 %v1014_v35 }
 0x22d   :  { %v1019_v55 = vpop.xlane.xlu1 %1018 }
 0x22e   :  { %v1145_v46 = vmul.f32 0.0078125, %v1019_v55 }
 0x230   :  { %v1209_v60 = vadd.f32 1e-05, %v1145_v46 }
 0x231   :  { %v1083_v51 = vpop.xlane.xlu1 %1082  ;;  %v1017_v7 = vpop.xlane.xlu0 %1016 }
 0x232   :  { %1890 = vrsqrt.f32 %v1209_v60  ;;  %v1177_v57 = vmul.f32 0.0078125, %v1083_v51  ;;  %v1144_v56 = vmul.f32 0.0078125, %v1017_v7  ;;  %v2700_v60 = vld [vmem:[%s3084_s2] ss:$0 sm:$0xff] }
 0x234   :  { %v1241_v39 = vadd.f32 1e-05, %v1177_v57  ;;  %v1208_v59 = vadd.f32 1e-05, %v1144_v56 }
 0x235   :  { %v1023_v0 = vpop.xlane.xlu1 %1022  ;;  %v1081_v53 = vpop.xlane.xlu0 %1080 }
 0x236   :  { %1892 = vrsqrt.f32 %v1241_v39  ;;  %v1147_v1 = vmul.f32 0.0078125, %v1023_v0  ;;  %v1176_v50 = vmul.f32 0.0078125, %v1081_v53 }
 0x237   :  { %1894 = vrsqrt.f32 %v1208_v59 }
 0x238   :  { %v1211_v62 = vadd.f32 1e-05, %v1147_v1  ;;  %v1240_v58 = vadd.f32 1e-05, %v1176_v50  ;;  %v2706_v1 = vld [vmem:[%s3085_s3] ss:$0 sm:$0xff] }
 0x239   :  { %v1087_v54 = vpop.xlane.xlu1 %1086  ;;  %v1021_v35 = vpop.xlane.xlu0 %1020 }
 0x23a   :  { %1896 = vrsqrt.f32 %v1211_v62  ;;  %v1179_v55 = vmul.f32 0.0078125, %v1087_v54  ;;  %v1146_v46 = vmul.f32 0.0078125, %v1021_v35 }
 0x23b   :  { %1898 = vrsqrt.f32 %v1240_v58 }
 0x23c   :  { %v1891_v31 = vpop.eup %1890  ;;  %v1243_v51 = vadd.f32 1e-05, %v1179_v55  ;;  %v1210_v7 = vadd.f32 1e-05, %v1146_v46 }
 0x23d   :  { %v1337_v0 = vmul.f32 %v1891_v31, %v2378_v4  ;;  %v1027_v53 = vpop.xlane.xlu1 %1026  ;;  %v1085_v57 = vpop.xlane.xlu0 %1084 }
 0x23e   :  { %1900 = vrsqrt.f32 %v1243_v51  ;;  %v1149_v54 = vmul.f32 0.0078125, %v1027_v53  ;;  %v1178_v58 = vmul.f32 0.0078125, %v1085_v57 }
 0x23f   :  { %v1408_v56 = vmul.f32 %v2700_v60, %v1337_v0  ;;  %1902 = vrsqrt.f32 %v1210_v7 }
 0x240   :  { %v1893_v39 = vpop.eup %1892  ;;  %v1213_v59 = vadd.f32 1e-05, %v1149_v54  ;;  %v1242_v50 = vadd.f32 1e-05, %v1178_v58 }
 0x241   :  { %v1895_v62 = vpop.eup %1894  ;;  %v1479_v35 = vadd.f32 %v2706_v1, %v1408_v56  ;;  %v1369_v4 = vmul.f32 %v1893_v39, %v2383_v10  ;;  %v1091_v31 = vpop.xlane.xlu1 %1090  ;;  %v3164_v56 = vld [vmem:[#allocation21_spill] sm:$0xff] }
 0x242   :  { %v1025_v55 = vpop.xlane.xlu0 %1024  ;;  %v1336_v46 = vmul.f32 %v1895_v62, %v2386_v11  ;;  %1904 = vrsqrt.f32 %v1213_v59  ;;  %v1181_v3 = vmul.f32 0.0078125, %v1091_v31 }
 0x243   :  { %v1148_v51 = vmul.f32 0.0078125, %v1025_v55  ;;  %1543 = vst [vmem:[%s3086_s4 + $0x8] sm:$0xff] %v1479_v35  ;;  %v1440_v7 = vmul.f32 %v2700_v60, %v1369_v4  ;;  %1906 = vrsqrt.f32 %v1242_v50 }
 0x244   :  { %v1897_v0 = vpop.eup %1896  ;;  %v1407_v53 = vmul.f32 %v2700_v60, %v1336_v46  ;;  %v1245_v57 = vadd.f32 1e-05, %v1181_v3 }
 0x245   :  { %v1212_v54 = vadd.f32 1e-05, %v1148_v51  ;;  %v1899_v10 = vpop.eup %1898  ;;  %v1511_v58 = vadd.f32 %v2706_v1, %v1440_v7  ;;  %v1339_v11 = vmul.f32 %v1897_v0, %v3164_v56  ;;  %v1031_v39 = vpop.xlane.xlu1 %1030 }
 0x246   :  { %v1089_v59 = vpop.xlane.xlu0 %1088  ;;  %v1478_v62 = vadd.f32 %v2706_v1, %v1407_v53  ;;  %v1368_v31 = vmul.f32 %v1899_v10, %v2396_v13  ;;  %1908 = vrsqrt.f32 %v1245_v57  ;;  %v1151_v35 = vmul.f32 0.0078125, %v1031_v39 }
 0x247   :  { %1575 = vst [vmem:[%s3086_s4 + $0x108] sm:$0xff] %v1511_v58  ;;  %v1410_v3 = vmul.f32 %v2700_v60, %v1339_v11  ;;  %1910 = vrsqrt.f32 %v1212_v54  ;;  %v1180_v50 = vmul.f32 0.0078125, %v1089_v59 }
 0x248   :  { %v1901_v4 = vpop.eup %1900  ;;  %1542 = vst [vmem:[%s3086_s4] sm:$0xff] %v1478_v62  ;;  %v1439_v55 = vmul.f32 %v2700_v60, %v1368_v31  ;;  %v1215_v46 = vadd.f32 1e-05, %v1151_v35 }
 0x249   :  { %v1903_v51 = vpop.eup %1902  ;;  %v1481_v13 = vadd.f32 %v2706_v1, %v1410_v3  ;;  %v1371_v7 = vmul.f32 %v1901_v4, %v2403_v9  ;;  %v1244_v0 = vadd.f32 1e-05, %v1180_v50  ;;  %v1095_v53 = vpop.xlane.xlu1 %1094 }
 0x24a   :  { %v1029_v57 = vpop.xlane.xlu0 %1028  ;;  %v1510_v10 = vadd.f32 %v2706_v1, %v1439_v55  ;;  %v1338_v54 = vmul.f32 %v1903_v51, %v2406_v2  ;;  %1912 = vrsqrt.f32 %v1215_v46  ;;  %v1183_v58 = vmul.f32 0.0078125, %v1095_v53 }
 0x24b   :  { %1545 = vst [vmem:[%s3086_s4 + $0x18] sm:$0xff] %v1481_v13  ;;  %v1442_v56 = vmul.f32 %v2700_v60, %v1371_v7  ;;  %1914 = vrsqrt.f32 %v1244_v0  ;;  %v1150_v11 = vmul.f32 0.0078125, %v1029_v57 }
 0x24c   :  { %v1905_v39 = vpop.eup %1904  ;;  %1574 = vst [vmem:[%s3086_s4 + $0x100] sm:$0xff] %v1510_v10  ;;  %v1409_v9 = vmul.f32 %v2700_v60, %v1338_v54  ;;  %v1247_v59 = vadd.f32 1e-05, %v1183_v58 }
 0x24d   :  { %v1907_v62 = vpop.eup %1906  ;;  %v1513_v2 = vadd.f32 %v2706_v1, %v1442_v56  ;;  %v1341_v31 = vmul.f32 %v1905_v39, %v2416_v17  ;;  %v1214_v35 = vadd.f32 1e-05, %v1150_v11  ;;  %v1035_v3 = vpop.xlane.xlu1 %1034 }
 0x24e   :  { %v1093_v50 = vpop.xlane.xlu0 %1092  ;;  %v1480_v4 = vadd.f32 %v2706_v1, %v1409_v9  ;;  %v1370_v55 = vmul.f32 %v1907_v62, %v2409_v63  ;;  %1916 = vrsqrt.f32 %v1247_v59  ;;  %v1153_v46 = vmul.f32 0.0078125, %v1035_v3 }
 0x24f   :  { %1577 = vst [vmem:[%s3086_s4 + $0x118] sm:$0xff] %v1513_v2  ;;  %v1412_v51 = vmul.f32 %v2700_v60, %v1341_v31  ;;  %1918 = vrsqrt.f32 %v1214_v35  ;;  %v1182_v13 = vmul.f32 0.0078125, %v1093_v50 }
 0x250   :  { %v1909_v7 = vpop.eup %1908  ;;  %1544 = vst [vmem:[%s3086_s4 + $0x10] sm:$0xff] %v1480_v4  ;;  %v1441_v17 = vmul.f32 %v2700_v60, %v1370_v55  ;;  %v1217_v0 = vadd.f32 1e-05, %v1153_v46 }
 0x251   :  { %v1911_v53 = vpop.eup %1910  ;;  %v1483_v63 = vadd.f32 %v2706_v1, %v1412_v51  ;;  %v1373_v57 = vmul.f32 %v1909_v7, %v2426_v14  ;;  %v1246_v10 = vadd.f32 1e-05, %v1182_v13  ;;  %v1099_v54 = vpop.xlane.xlu1 %1098 }
 0x252   :  { %v1033_v58 = vpop.xlane.xlu0 %1032  ;;  %v1512_v56 = vadd.f32 %v2706_v1, %v1441_v17  ;;  %v1340_v11 = vmul.f32 %v1911_v53, %v2423_v8  ;;  %1920 = vrsqrt.f32 %v1217_v0  ;;  %v1185_v39 = vmul.f32 0.0078125, %v1099_v54 }
 0x253   :  { %1547 = vst [vmem:[%s3086_s4 + $0x28] sm:$0xff] %v1483_v63  ;;  %v1444_v9 = vmul.f32 %v2700_v60, %v1373_v57  ;;  %1922 = vrsqrt.f32 %v1246_v10  ;;  %v1152_v59 = vmul.f32 0.0078125, %v1033_v58 }
 0x254   :  { %v1913_v62 = vpop.eup %1912  ;;  %1576 = vst [vmem:[%s3086_s4 + $0x110] sm:$0xff] %v1512_v56  ;;  %v1411_v14 = vmul.f32 %v2700_v60, %v1340_v11  ;;  %v1249_v2 = vadd.f32 1e-05, %v1185_v39 }
 0x255   :  { %v1915_v31 = vpop.eup %1914  ;;  %v1515_v8 = vadd.f32 %v2706_v1, %v1444_v9  ;;  %v1343_v35 = vmul.f32 %v1913_v62, %v2436_v22  ;;  %v1216_v3 = vadd.f32 1e-05, %v1152_v59  ;;  %v1039_v50 = vpop.xlane.xlu1 %1038 }
 0x256   :  { %v1097_v4 = vpop.xlane.xlu0 %1096  ;;  %v1482_v55 = vadd.f32 %v2706_v1, %v1411_v14  ;;  %v1372_v46 = vmul.f32 %v1915_v31, %v2429_v6  ;;  %1924 = vrsqrt.f32 %v1249_v2  ;;  %v1155_v51 = vmul.f32 0.0078125, %v1039_v50 }
 0x257   :  { %1579 = vst [vmem:[%s3086_s4 + $0x128] sm:$0xff] %v1515_v8  ;;  %v1414_v13 = vmul.f32 %v2700_v60, %v1343_v35  ;;  %1926 = vrsqrt.f32 %v1216_v3  ;;  %v1184_v7 = vmul.f32 0.0078125, %v1097_v4 }
 0x258   :  { %v1917_v17 = vpop.eup %1916  ;;  %1546 = vst [vmem:[%s3086_s4 + $0x20] sm:$0xff] %v1482_v55  ;;  %v1443_v22 = vmul.f32 %v2700_v60, %v1372_v46  ;;  %v1219_v0 = vadd.f32 1e-05, %v1155_v51 }
 0x259   :  { %v1919_v53 = vpop.eup %1918  ;;  %v1485_v6 = vadd.f32 %v2706_v1, %v1414_v13  ;;  %v1375_v63 = vmul.f32 %v1917_v17, %v2446_v20  ;;  %v1248_v57 = vadd.f32 1e-05, %v1184_v7  ;;  %v1103_v10 = vpop.xlane.xlu1 %1102 }
 0x25a   :  { %v1037_v54 = vpop.xlane.xlu0 %1036  ;;  %v1514_v58 = vadd.f32 %v2706_v1, %v1443_v22  ;;  %v1342_v56 = vmul.f32 %v1919_v53, %v2443_v61  ;;  %1928 = vrsqrt.f32 %v1219_v0  ;;  %v1187_v11 = vmul.f32 0.0078125, %v1103_v10 }
 0x25b   :  { %1549 = vst [vmem:[%s3086_s4 + $0x38] sm:$0xff] %v1485_v6  ;;  %v1446_v39 = vmul.f32 %v2700_v60, %v1375_v63  ;;  %1930 = vrsqrt.f32 %v1248_v57  ;;  %v1154_v9 = vmul.f32 0.0078125, %v1037_v54 }
 0x25c   :  { %v1921_v59 = vpop.eup %1920  ;;  %1578 = vst [vmem:[%s3086_s4 + $0x120] sm:$0xff] %v1514_v58  ;;  %v1413_v20 = vmul.f32 %v2700_v60, %v1342_v56  ;;  %v1251_v62 = vadd.f32 1e-05, %v1187_v11 }
 0x25d   :  { %v1923_v14 = vpop.eup %1922  ;;  %v1517_v61 = vadd.f32 %v2706_v1, %v1446_v39  ;;  %v1345_v2 = vmul.f32 %v1921_v59, %v2456_v26  ;;  %v1218_v31 = vadd.f32 1e-05, %v1154_v9  ;;  %v1043_v8 = vpop.xlane.xlu1 %1042 }
 0x25e   :  { %v1101_v35 = vpop.xlane.xlu0 %1100  ;;  %v1484_v3 = vadd.f32 %v2706_v1, %v1413_v20  ;;  %v1374_v50 = vmul.f32 %v1923_v14, %v2449_v15  ;;  %1932 = vrsqrt.f32 %v1251_v62  ;;  %v1157_v4 = vmul.f32 0.0078125, %v1043_v8 }
 0x25f   :  { %1581 = vst [vmem:[%s3086_s4 + $0x138] sm:$0xff] %v1517_v61  ;;  %v1416_v55 = vmul.f32 %v2700_v60, %v1345_v2  ;;  %1934 = vrsqrt.f32 %v1218_v31  ;;  %v1186_v46 = vmul.f32 0.0078125, %v1101_v35 }
 0x260   :  { %v1925_v51 = vpop.eup %1924  ;;  %1548 = vst [vmem:[%s3086_s4 + $0x30] sm:$0xff] %v1484_v3  ;;  %v1445_v26 = vmul.f32 %v2700_v60, %v1374_v50  ;;  %v1221_v13 = vadd.f32 1e-05, %v1157_v4 }
 0x261   :  { %v1927_v7 = vpop.eup %1926  ;;  %v1487_v15 = vadd.f32 %v2706_v1, %v1416_v55  ;;  %v1377_v17 = vmul.f32 %v1925_v51, %v2466_v24  ;;  %v1250_v22 = vadd.f32 1e-05, %v1186_v46  ;;  %v1107_v0 = vpop.xlane.xlu1 %1106 }
 0x262   :  { %v1041_v53 = vpop.xlane.xlu0 %1040  ;;  %v1516_v6 = vadd.f32 %v2706_v1, %v1445_v26  ;;  %v1344_v63 = vmul.f32 %v1927_v7, %v2463_v16  ;;  %1936 = vrsqrt.f32 %v1221_v13  ;;  %v1189_v57 = vmul.f32 0.0078125, %v1107_v0 }
 0x263   :  { %1551 = vst [vmem:[%s3086_s4 + $0x48] sm:$0xff] %v1487_v15  ;;  %v1448_v10 = vmul.f32 %v2700_v60, %v1377_v17  ;;  %1938 = vrsqrt.f32 %v1250_v22  ;;  %v1156_v54 = vmul.f32 0.0078125, %v1041_v53 }
 0x264   :  { %v1929_v58 = vpop.eup %1928  ;;  %1580 = vst [vmem:[%s3086_s4 + $0x130] sm:$0xff] %v1516_v6  ;;  %v1415_v24 = vmul.f32 %v2700_v60, %v1344_v63  ;;  %v1253_v56 = vadd.f32 1e-05, %v1189_v57 }
 0x265   :  { %v1931_v11 = vpop.eup %1930  ;;  %v1519_v16 = vadd.f32 %v2706_v1, %v1448_v10  ;;  %v1347_v39 = vmul.f32 %v1929_v58, %v2476_v30  ;;  %v1220_v9 = vadd.f32 1e-05, %v1156_v54  ;;  %v1047_v59 = vpop.xlane.xlu1 %1046 }
 0x266   :  { %v1105_v20 = vpop.xlane.xlu0 %1104  ;;  %v1486_v62 = vadd.f32 %v2706_v1, %v1415_v24  ;;  %v1376_v14 = vmul.f32 %v1931_v11, %v2469_v18  ;;  %1940 = vrsqrt.f32 %v1253_v56  ;;  %v1159_v61 = vmul.f32 0.0078125, %v1047_v59 }
 0x267   :  { %1583 = vst [vmem:[%s3086_s4 + $0x148] sm:$0xff] %v1519_v16  ;;  %v1418_v2 = vmul.f32 %v2700_v60, %v1347_v39  ;;  %1942 = vrsqrt.f32 %v1220_v9  ;;  %v1188_v31 = vmul.f32 0.0078125, %v1105_v20 }
 0x268   :  { %v1933_v8 = vpop.eup %1932  ;;  %1550 = vst [vmem:[%s3086_s4 + $0x40] sm:$0xff] %v1486_v62  ;;  %v1447_v30 = vmul.f32 %v2700_v60, %v1376_v14  ;;  %v1223_v35 = vadd.f32 1e-05, %v1159_v61 }
 0x269   :  { %v1935_v3 = vpop.eup %1934  ;;  %v1489_v18 = vadd.f32 %v2706_v1, %v1418_v2  ;;  %v1379_v50 = vmul.f32 %v1933_v8, %v2486_v28  ;;  %v1252_v4 = vadd.f32 1e-05, %v1188_v31  ;;  %v1111_v55 = vpop.xlane.xlu1 %1110 }
 0x26a   :  { %v1045_v46 = vpop.xlane.xlu0 %1044  ;;  %v1518_v51 = vadd.f32 %v2706_v1, %v1447_v30  ;;  %v1346_v26 = vmul.f32 %v1935_v3, %v2483_v19  ;;  %1944 = vrsqrt.f32 %v1223_v35  ;;  %v1191_v13 = vmul.f32 0.0078125, %v1111_v55 }
 0x26b   :  { %1553 = vst [vmem:[%s3086_s4 + $0x58] sm:$0xff] %v1489_v18  ;;  %v1450_v7 = vmul.f32 %v2700_v60, %v1379_v50  ;;  %1946 = vrsqrt.f32 %v1252_v4  ;;  %v1158_v15 = vmul.f32 0.0078125, %v1045_v46 }
 0x26c   :  { %v1937_v17 = vpop.eup %1936  ;;  %1582 = vst [vmem:[%s3086_s4 + $0x140] sm:$0xff] %v1518_v51  ;;  %v1417_v28 = vmul.f32 %v2700_v60, %v1346_v26  ;;  %v1255_v22 = vadd.f32 1e-05, %v1191_v13 }
 0x26d   :  { %v1939_v0 = vpop.eup %1938  ;;  %v1521_v19 = vadd.f32 %v2706_v1, %v1450_v7  ;;  %v1349_v53 = vmul.f32 %v1937_v17, %v2496_v34  ;;  %v1222_v6 = vadd.f32 1e-05, %v1158_v15  ;;  %v1051_v63 = vpop.xlane.xlu1 %1050 }
 0x26e   :  { %v1109_v57 = vpop.xlane.xlu0 %1108  ;;  %v1488_v10 = vadd.f32 %v2706_v1, %v1417_v28  ;;  %v1378_v54 = vmul.f32 %v1939_v0, %v2489_v21  ;;  %1948 = vrsqrt.f32 %v1255_v22  ;;  %v1161_v58 = vmul.f32 0.0078125, %v1051_v63 }
 0x26f   :  { %1585 = vst [vmem:[%s3086_s4 + $0x158] sm:$0xff] %v1521_v19  ;;  %v1420_v24 = vmul.f32 %v2700_v60, %v1349_v53  ;;  %1950 = vrsqrt.f32 %v1222_v6  ;;  %v1190_v56 = vmul.f32 0.0078125, %v1109_v57 }
 0x270   :  { %v1941_v11 = vpop.eup %1940  ;;  %1552 = vst [vmem:[%s3086_s4 + $0x50] sm:$0xff] %v1488_v10  ;;  %v1449_v34 = vmul.f32 %v2700_v60, %v1378_v54  ;;  %v1225_v16 = vadd.f32 1e-05, %v1161_v58 }
 0x271   :  { %v1943_v39 = vpop.eup %1942  ;;  %v1491_v21 = vadd.f32 %v2706_v1, %v1420_v24  ;;  %v1381_v9 = vmul.f32 %v1941_v11, %v2506_v32  ;;  %v1254_v59 = vadd.f32 1e-05, %v1190_v56  ;;  %v1115_v20 = vpop.xlane.xlu1 %1114 }
 0x272   :  { %v1049_v62 = vpop.xlane.xlu0 %1048  ;;  %v1520_v14 = vadd.f32 %v2706_v1, %v1449_v34  ;;  %v1348_v61 = vmul.f32 %v1943_v39, %v2503_v23  ;;  %1952 = vrsqrt.f32 %v1225_v16  ;;  %v1193_v2 = vmul.f32 0.0078125, %v1115_v20 }
 0x273   :  { %1555 = vst [vmem:[%s3086_s4 + $0x68] sm:$0xff] %v1491_v21  ;;  %v1452_v31 = vmul.f32 %v2700_v60, %v1381_v9  ;;  %1954 = vrsqrt.f32 %v1254_v59  ;;  %v1160_v8 = vmul.f32 0.0078125, %v1049_v62 }
 0x274   :  { %v1945_v30 = vpop.eup %1944  ;;  %1584 = vst [vmem:[%s3086_s4 + $0x150] sm:$0xff] %v1520_v14  ;;  %v1419_v32 = vmul.f32 %v2700_v60, %v1348_v61  ;;  %v1257_v35 = vadd.f32 1e-05, %v1193_v2 }
 0x275   :  { %v1947_v3 = vpop.eup %1946  ;;  %v1523_v23 = vadd.f32 %v2706_v1, %v1452_v31  ;;  %v1351_v18 = vmul.f32 %v1945_v30, %v2516_v38  ;;  %v1224_v50 = vadd.f32 1e-05, %v1160_v8  ;;  %v1055_v4 = vpop.xlane.xlu1 %1054 }
 0x276   :  { %v1113_v55 = vpop.xlane.xlu0 %1112  ;;  %v1490_v46 = vadd.f32 %v2706_v1, %v1419_v32  ;;  %v1380_v51 = vmul.f32 %v1947_v3, %v2509_v25  ;;  %1956 = vrsqrt.f32 %v1257_v35  ;;  %v1163_v26 = vmul.f32 0.0078125, %v1055_v4 }
 0x277   :  { %1587 = vst [vmem:[%s3086_s4 + $0x168] sm:$0xff] %v1523_v23  ;;  %v1422_v13 = vmul.f32 %v2700_v60, %v1351_v18  ;;  %1958 = vrsqrt.f32 %v1224_v50  ;;  %v1192_v7 = vmul.f32 0.0078125, %v1113_v55 }
 0x278   :  { %v1949_v15 = vpop.eup %1948  ;;  %1554 = vst [vmem:[%s3086_s4 + $0x60] sm:$0xff] %v1490_v46  ;;  %v1451_v38 = vmul.f32 %v2700_v60, %v1380_v51  ;;  %v1227_v17 = vadd.f32 1e-05, %v1163_v26 }
 0x279   :  { %v1951_v28 = vpop.eup %1950  ;;  %v1493_v25 = vadd.f32 %v2706_v1, %v1422_v13  ;;  %v1383_v22 = vmul.f32 %v1949_v15, %v2526_v36  ;;  %v1256_v0 = vadd.f32 1e-05, %v1192_v7  ;;  %v1119_v19 = vpop.xlane.xlu1 %1118 }
 0x27a   :  { %v1053_v53 = vpop.xlane.xlu0 %1052  ;;  %v1522_v6 = vadd.f32 %v2706_v1, %v1451_v38  ;;  %v1350_v63 = vmul.f32 %v1951_v28, %v2523_v27  ;;  %1960 = vrsqrt.f32 %v1227_v17  ;;  %v1195_v57 = vmul.f32 0.0078125, %v1119_v19 }
 0x27b   :  { %1557 = vst [vmem:[%s3086_s4 + $0x78] sm:$0xff] %v1493_v25  ;;  %v1454_v10 = vmul.f32 %v2700_v60, %v1383_v22  ;;  %1962 = vrsqrt.f32 %v1256_v0  ;;  %v1162_v54 = vmul.f32 0.0078125, %v1053_v53 }
 0x27c   :  { %v1953_v58 = vpop.eup %1952  ;;  %1586 = vst [vmem:[%s3086_s4 + $0x160] sm:$0xff] %v1522_v6  ;;  %v1421_v36 = vmul.f32 %v2700_v60, %v1350_v63  ;;  %v1259_v24 = vadd.f32 1e-05, %v1195_v57 }
 0x27d   :  { %v1955_v56 = vpop.eup %1954  ;;  %v1525_v27 = vadd.f32 %v2706_v1, %v1454_v10  ;;  %v1353_v11 = vmul.f32 %v1953_v58, %v2536_v42  ;;  %v1226_v34 = vadd.f32 1e-05, %v1162_v54  ;;  %v1059_v16 = vpop.xlane.xlu1 %1058 }
 0x27e   :  { %v1117_v39 = vpop.xlane.xlu0 %1116  ;;  %v1492_v21 = vadd.f32 %v2706_v1, %v1421_v36  ;;  %v1382_v9 = vmul.f32 %v1955_v56, %v2529_v40  ;;  %1964 = vrsqrt.f32 %v1259_v24  ;;  %v1165_v59 = vmul.f32 0.0078125, %v1059_v16 }
 0x27f   :  { %1589 = vst [vmem:[%s3086_s4 + $0x178] sm:$0xff] %v1525_v27  ;;  %v1424_v20 = vmul.f32 %v2700_v60, %v1353_v11  ;;  %1966 = vrsqrt.f32 %v1226_v34  ;;  %v1194_v62 = vmul.f32 0.0078125, %v1117_v39 }
 0x280   :  { %v1957_v14 = vpop.eup %1956  ;;  %1556 = vst [vmem:[%s3086_s4 + $0x70] sm:$0xff] %v1492_v21  ;;  %v1453_v42 = vmul.f32 %v2700_v60, %v1382_v9  ;;  %v1229_v61 = vadd.f32 1e-05, %v1165_v59 }
 0x281   :  { %v1959_v2 = vpop.eup %1958  ;;  %v1495_v40 = vadd.f32 %v2706_v1, %v1424_v20  ;;  %v1385_v31 = vmul.f32 %v1957_v14, %v2546_v12  ;;  %v1258_v8 = vadd.f32 1e-05, %v1194_v62  ;;  %v1123_v30 = vpop.xlane.xlu1 %1122 }
 0x282   :  { %v1057_v32 = vpop.xlane.xlu0 %1056  ;;  %v1524_v35 = vadd.f32 %v2706_v1, %v1453_v42  ;;  %v1352_v3 = vmul.f32 %v1959_v2, %v2541_v5  ;;  %1968 = vrsqrt.f32 %v1229_v61  ;;  %v1197_v23 = vmul.f32 0.0078125, %v1123_v30 }
 0x283   :  { %1559 = vst [vmem:[%s3086_s4 + $0x88] sm:$0xff] %v1495_v40  ;;  %v1456_v18 = vmul.f32 %v2700_v60, %v1385_v31  ;;  %1970 = vrsqrt.f32 %v1258_v8  ;;  %v1164_v50 = vmul.f32 0.0078125, %v1057_v32 }
 0x284   :  { %v1961_v4 = vpop.eup %1960  ;;  %1588 = vst [vmem:[%s3086_s4 + $0x170] sm:$0xff] %v1524_v35  ;;  %v1423_v12 = vmul.f32 %v2700_v60, %v1352_v3  ;;  %v1261_v55 = vadd.f32 1e-05, %v1197_v23 }
 0x285   :  { %v1963_v46 = vpop.eup %1962  ;;  %v1527_v5 = vadd.f32 %v2706_v1, %v1456_v18  ;;  %v1355_v51 = vmul.f32 %v1961_v4, %v2556_v41  ;;  %v1228_v26 = vadd.f32 1e-05, %v1164_v50  ;;  %v1063_v13 = vpop.xlane.xlu1 %1062 }
 0x286   :  { %v1121_v7 = vpop.xlane.xlu0 %1120  ;;  %v1494_v15 = vadd.f32 %v2706_v1, %v1423_v12  ;;  %v1384_v38 = vmul.f32 %v1963_v46, %v2549_v44  ;;  %1972 = vrsqrt.f32 %v1261_v55  ;;  %v1167_v17 = vmul.f32 0.0078125, %v1063_v13 }
 0x287   :  { %1591 = vst [vmem:[%s3086_s4 + $0x188] sm:$0xff] %v1527_v5  ;;  %v1426_v28 = vmul.f32 %v2700_v60, %v1355_v51  ;;  %1974 = vrsqrt.f32 %v1228_v26  ;;  %v1196_v25 = vmul.f32 0.0078125, %v1121_v7 }
 0x288   :  { %v1965_v22 = vpop.eup %1964  ;;  %1558 = vst [vmem:[%s3086_s4 + $0x80] sm:$0xff] %v1494_v15  ;;  %v1455_v41 = vmul.f32 %v2700_v60, %v1384_v38  ;;  %v1231_v0 = vadd.f32 1e-05, %v1167_v17 }
 0x289   :  { %v1967_v19 = vpop.eup %1966  ;;  %v1497_v44 = vadd.f32 %v2706_v1, %v1426_v28  ;;  %v1387_v53 = vmul.f32 %v1965_v22, %v2566_v29  ;;  %v1260_v6 = vadd.f32 1e-05, %v1196_v25  ;;  %v1127_v63 = vpop.xlane.xlu1 %1126 }
 0x28a   :  { %v1061_v57 = vpop.xlane.xlu0 %1060  ;;  %v1526_v10 = vadd.f32 %v2706_v1, %v1455_v41  ;;  %v1354_v54 = vmul.f32 %v1967_v19, %v2561_v43  ;;  %1976 = vrsqrt.f32 %v1231_v0  ;;  %v1199_v58 = vmul.f32 0.0078125, %v1127_v63 }
 0x28b   :  { %1561 = vst [vmem:[%s3086_s4 + $0x98] sm:$0xff] %v1497_v44  ;;  %v1458_v36 = vmul.f32 %v2700_v60, %v1387_v53  ;;  %1978 = vrsqrt.f32 %v1260_v6  ;;  %v1166_v24 = vmul.f32 0.0078125, %v1061_v57  ;;  %v3165_v53 = vld [vmem:[#allocation22_spill] sm:$0xff] }
 0x28c   :  { %v1969_v56 = vpop.eup %1968  ;;  %1590 = vst [vmem:[%s3086_s4 + $0x180] sm:$0xff] %v1526_v10  ;;  %v1425_v29 = vmul.f32 %v2700_v60, %v1354_v54  ;;  %v1263_v27 = vadd.f32 1e-05, %v1199_v58 }
 0x28d   :  { %v1971_v11 = vpop.eup %1970  ;;  %v1529_v43 = vadd.f32 %v2706_v1, %v1458_v36  ;;  %v1357_v34 = vmul.f32 %v1969_v56, %v2576_v45  ;;  %v1230_v16 = vadd.f32 1e-05, %v1166_v24  ;;  %v1067_v39 = vpop.xlane.xlu1 %1066  ;;  %v3166_v56 = vld [vmem:[#allocation24_spill] sm:$0xff] }
 0x28e   :  { %v1125_v21 = vpop.xlane.xlu0 %1124  ;;  %v1496_v9 = vadd.f32 %v2706_v1, %v1425_v29  ;;  %v1386_v59 = vmul.f32 %v1971_v11, %v2569_v48  ;;  %1980 = vrsqrt.f32 %v1263_v27  ;;  %v1169_v20 = vmul.f32 0.0078125, %v1067_v39 }
 0x28f   :  { %1593 = vst [vmem:[%s3086_s4 + $0x198] sm:$0xff] %v1529_v43  ;;  %v1428_v62 = vmul.f32 %v2700_v60, %v1357_v34  ;;  %1982 = vrsqrt.f32 %v1230_v16  ;;  %v1198_v14 = vmul.f32 0.0078125, %v1125_v21  ;;  %v3167_v16 = vld [vmem:[#allocation23_spill] sm:$0xff] }
 0x290   :  { %v1973_v42 = vpop.eup %1972  ;;  %1560 = vst [vmem:[%s3086_s4 + $0x90] sm:$0xff] %v1496_v9  ;;  %v1457_v45 = vmul.f32 %v2700_v60, %v1386_v59  ;;  %v1233_v61 = vadd.f32 1e-05, %v1169_v20 }
 0x291   :  { %v1975_v2 = vpop.eup %1974  ;;  %v1499_v48 = vadd.f32 %v2706_v1, %v1428_v62  ;;  %v1389_v40 = vmul.f32 %v1973_v42, %v2586_v33  ;;  %v1262_v31 = vadd.f32 1e-05, %v1198_v14  ;;  %v1131_v8 = vpop.xlane.xlu1 %1130 }
 0x292   :  { %v1065_v30 = vpop.xlane.xlu0 %1064  ;;  %v1528_v32 = vadd.f32 %v2706_v1, %v1457_v45  ;;  %v1356_v35 = vmul.f32 %v1975_v2, %v2581_v47  ;;  %1984 = vrsqrt.f32 %v1233_v61  ;;  %v1201_v3 = vmul.f32 0.0078125, %v1131_v8  ;;  %v3168_v61 = vld [vmem:[#allocation8_spill] sm:$0xff] }
 0x293   :  { %1563 = vst [vmem:[%s3086_s4 + $0xa8] sm:$0xff] %v1499_v48  ;;  %v1460_v23 = vmul.f32 %v2700_v60, %v1389_v40  ;;  %1986 = vrsqrt.f32 %v1262_v31  ;;  %v1168_v18 = vmul.f32 0.0078125, %v1065_v30  ;;  %v3169_v30 = vld [vmem:[#allocation25_spill] sm:$0xff] }
 0x294   :  { %v1977_v50 = vpop.eup %1976  ;;  %1592 = vst [vmem:[%s3086_s4 + $0x190] sm:$0xff] %v1528_v32  ;;  %v1427_v33 = vmul.f32 %v2700_v60, %v1356_v35  ;;  %v1265_v4 = vadd.f32 1e-05, %v1201_v3 }
 0x295   :  { %v1979_v12 = vpop.eup %1978  ;;  %v1531_v47 = vadd.f32 %v2706_v1, %v1460_v23  ;;  %v1359_v55 = vmul.f32 %v1977_v50, %v2596_v49  ;;  %v1232_v46 = vadd.f32 1e-05, %v1168_v18  ;;  %v1071_v5 = vpop.xlane.xlu1 %1070 }
 0x296   :  { %v1129_v51 = vpop.xlane.xlu0 %1128  ;;  %v1498_v26 = vadd.f32 %v2706_v1, %v1427_v33  ;;  %v1388_v13 = vmul.f32 %v1979_v12, %v2589_v52  ;;  %1988 = vrsqrt.f32 %v1265_v4  ;;  %v1171_v7 = vmul.f32 0.0078125, %v1071_v5 }
 0x297   :  { %1595 = vst [vmem:[%s3086_s4 + $0x1a8] sm:$0xff] %v1531_v47  ;;  %v1430_v15 = vmul.f32 %v2700_v60, %v1359_v55  ;;  %1990 = vrsqrt.f32 %v1232_v46  ;;  %v1200_v38 = vmul.f32 0.0078125, %v1129_v51  ;;  %v3170_v47 = vld [vmem:[#allocation10_spill] sm:$0xff] }
 0x298   :  { %v1981_v17 = vpop.eup %1980  ;;  %1562 = vst [vmem:[%s3086_s4 + $0xa0] sm:$0xff] %v1498_v26  ;;  %v1459_v49 = vmul.f32 %v2700_v60, %v1388_v13  ;;  %v1235_v28 = vadd.f32 1e-05, %v1171_v7  ;;  %v3171_v13 = vld [vmem:[#allocation9_spill] sm:$0xff] }
 0x299   :  { %v1983_v25 = vpop.eup %1982  ;;  %v1501_v52 = vadd.f32 %v2706_v1, %v1430_v15  ;;  %v1391_v22 = vmul.f32 %v1981_v17, %v2606_v37  ;;  %v1264_v41 = vadd.f32 1e-05, %v1200_v38  ;;  %v1135_v0 = vpop.xlane.xlu1 %1134 }
 0x29a   :  { %v1069_v19 = vpop.xlane.xlu0 %1068  ;;  %v1530_v44 = vadd.f32 %v2706_v1, %v1459_v49  ;;  %v1358_v6 = vmul.f32 %v1983_v25, %v3165_v53  ;;  %1992 = vrsqrt.f32 %v1235_v28  ;;  %v1203_v63 = vmul.f32 0.0078125, %v1135_v0 }
 0x29b   :  { %1565 = vst [vmem:[%s3086_s4 + $0xb8] sm:$0xff] %v1501_v52  ;;  %v1462_v57 = vmul.f32 %v2700_v60, %v1391_v22  ;;  %1994 = vrsqrt.f32 %v1264_v41  ;;  %v1170_v10 = vmul.f32 0.0078125, %v1069_v19  ;;  %v3172_v41 = vld [vmem:[#allocation11_spill] sm:$0xff] }
 0x29c   :  { %v1985_v54 = vpop.eup %1984  ;;  %1594 = vst [vmem:[%s3086_s4 + $0x1a0] sm:$0xff] %v1530_v44  ;;  %v1429_v37 = vmul.f32 %v2700_v60, %v1358_v6  ;;  %v1267_v58 = vadd.f32 1e-05, %v1203_v63  ;;  %v3173_v63 = vld [vmem:[#allocation12_spill] sm:$0xff] }
 0x29d   :  { %v1987_v36 = vpop.eup %1986  ;;  %v1533_v24 = vadd.f32 %v2706_v1, %v1462_v57  ;;  %v1361_v29 = vmul.f32 %v1985_v54, %v3166_v56  ;;  %v1234_v27 = vadd.f32 1e-05, %v1170_v10  ;;  %v1075_v11 = vpop.xlane.xlu1 %1074 }
 0x29e   :  { %v1133_v43 = vpop.xlane.xlu0 %1132  ;;  %v1500_v34 = vadd.f32 %v2706_v1, %v1429_v37  ;;  %v1390_v39 = vmul.f32 %v1987_v36, %v3167_v16  ;;  %1996 = vrsqrt.f32 %v1267_v58  ;;  %v1173_v21 = vmul.f32 0.0078125, %v1075_v11 }
 0x29f   :  { %1597 = vst [vmem:[%s3086_s4 + $0x1b8] sm:$0xff] %v1533_v24  ;;  %v1432_v9 = vmul.f32 %v2700_v60, %v1361_v29  ;;  %1998 = vrsqrt.f32 %v1234_v27  ;;  %v1202_v59 = vmul.f32 0.0078125, %v1133_v43  ;;  %v3174_v27 = vld [vmem:[#allocation14_spill] sm:$0xff] }
 0x2a0   :  { %v1989_v20 = vpop.eup %1988  ;;  %1564 = vst [vmem:[%s3086_s4 + $0xb0] sm:$0xff] %v1500_v34  ;;  %v1461_v62 = vmul.f32 %v2700_v60, %v1390_v39  ;;  %v1237_v14 = vadd.f32 1e-05, %v1173_v21  ;;  %v3175_v39 = vld [vmem:[#allocation13_spill] sm:$0xff] }
 0x2a1   :  { %v1991_v42 = vpop.eup %1990  ;;  %v1503_v45 = vadd.f32 %v2706_v1, %v1432_v9  ;;  %v1393_v2 = vmul.f32 %v1989_v20, %v3168_v61  ;;  %v1266_v48 = vadd.f32 1e-05, %v1202_v59  ;;  %v1139_v40 = vpop.xlane.xlu1 %1138 }
 0x2a2   :  { %v1073_v31 = vpop.xlane.xlu0 %1072  ;;  %v1532_v8 = vadd.f32 %v2706_v1, %v1461_v62  ;;  %v1360_v32 = vmul.f32 %v1991_v42, %v3169_v30  ;;  %2000 = vrsqrt.f32 %v1237_v14  ;;  %v1205_v35 = vmul.f32 0.0078125, %v1139_v40  ;;  %v2018_v62 = vld [vmem:[%s3084_s2] ss:$0 sm:$0xff] }
 0x2a3   :  { %1567 = vst [vmem:[%s3086_s4 + $0xc8] sm:$0xff] %v1503_v45  ;;  %v1464_v3 = vmul.f32 %v2700_v60, %v1393_v2  ;;  %2002 = vrsqrt.f32 %v1266_v48  ;;  %v1172_v23 = vmul.f32 0.0078125, %v1073_v31  ;;  %v3176_v2 = vld [vmem:[#allocation15_spill] sm:$0xff] }
 0x2a4   :  { %v1993_v18 = vpop.eup %1992  ;;  %1596 = vst [vmem:[%s3086_s4 + $0x1b0] sm:$0xff] %v1532_v8  ;;  %v1431_v50 = vmul.f32 %v2700_v60, %v1360_v32  ;;  %v1269_v33 = vadd.f32 1e-05, %v1205_v35 }
 0x2a5   :  { %v1995_v4 = vpop.eup %1994  ;;  %v1535_v12 = vadd.f32 %v2706_v1, %v1464_v3  ;;  %v1363_v55 = vmul.f32 %v1993_v18, %v3170_v47  ;;  %v1236_v46 = vadd.f32 1e-05, %v1172_v23  ;;  %v1079_v5 = vpop.xlane.xlu1 %1078  ;;  %v2019_v3 = vld [vmem:[%s3085_s3] ss:$0 sm:$0xff]  ;;  %v3178_v23 = vld [vmem:[#allocation17_spill] sm:$0xff] }
 0x2a6   :  { %v1137_v51 = vpop.xlane.xlu0 %1136  ;;  %v1502_v26 = vadd.f32 %v2706_v1, %v1431_v50  ;;  %v1392_v7 = vmul.f32 %v1995_v4, %v3171_v13  ;;  %2004 = vrsqrt.f32 %v1269_v33  ;;  %v1175_v15 = vmul.f32 0.0078125, %v1079_v5  ;;  %v3179_v33 = vld [vmem:[#allocation26_spill] sm:$0xff] }
 0x2a7   :  { %1599 = vst [vmem:[%s3086_s4 + $0x1c8] sm:$0xff] %v1535_v12  ;;  %v1434_v38 = vmul.f32 %v2700_v60, %v1363_v55  ;;  %2006 = vrsqrt.f32 %v1236_v46  ;;  %v1204_v17 = vmul.f32 0.0078125, %v1137_v51  ;;  %v3180_v51 = vld [vmem:[#allocation18_spill] sm:$0xff] }
 0x2a8   :  { %v1997_v49 = vpop.eup %1996  ;;  %1566 = vst [vmem:[%s3086_s4 + $0xc0] sm:$0xff] %v1502_v26  ;;  %v1463_v28 = vmul.f32 %v2700_v60, %v1392_v7  ;;  %v1239_v25 = vadd.f32 1e-05, %v1175_v15  ;;  %v3181_v7 = vld [vmem:[#allocation19_spill] sm:$0xff] }
 0x2a9   :  { %v1999_v52 = vpop.eup %1998  ;;  %v1505_v22 = vadd.f32 %v2706_v1, %v1434_v38  ;;  %v1395_v0 = vmul.f32 %v1997_v49, %v3172_v41  ;;  %v1268_v19 = vadd.f32 1e-05, %v1204_v17  ;;  %v1143_v44 = vpop.xlane.xlu1 %1142 }
 0x2aa   :  { %v1077_v53 = vpop.xlane.xlu0 %1076  ;;  %v1534_v6 = vadd.f32 %v2706_v1, %v1463_v28  ;;  %v1362_v57 = vmul.f32 %v1999_v52, %v3173_v63  ;;  %2008 = vrsqrt.f32 %v1239_v25  ;;  %v1207_v10 = vmul.f32 0.0078125, %v1143_v44  ;;  %v3182_v25 = vld [vmem:[#allocation20_spill] sm:$0xff] }
 0x2ab   :  { %1569 = vst [vmem:[%s3086_s4 + $0xd8] sm:$0xff] %v1505_v22  ;;  %v1466_v54 = vmul.f32 %v2700_v60, %v1395_v0  ;;  %2010 = vrsqrt.f32 %v1268_v19  ;;  %v1174_v37 = vmul.f32 0.0078125, %v1077_v53 }
 0x2ac   :  { %v2001_v58 = vpop.eup %2000  ;;  %1598 = vst [vmem:[%s3086_s4 + $0x1c0] sm:$0xff] %v1534_v6  ;;  %v1433_v36 = vmul.f32 %v2700_v60, %v1362_v57  ;;  %v1271_v24 = vadd.f32 1e-05, %v1207_v10 }
 0x2ad   :  { %v2003_v56 = vpop.eup %2002  ;;  %v1537_v29 = vadd.f32 %v2706_v1, %v1466_v54  ;;  %v1365_v11 = vmul.f32 %v2001_v58, %v3174_v27  ;;  %v1238_v43 = vadd.f32 1e-05, %v1174_v37 }
 0x2ae   :  { %v1141_v34 = vpop.xlane.xlu0 %1140  ;;  %v1504_v16 = vadd.f32 %v2706_v1, %v1433_v36  ;;  %v1394_v21 = vmul.f32 %v2003_v56, %v3175_v39  ;;  %2012 = vrsqrt.f32 %v1271_v24 }
 0x2af   :  { %v1206_v9 = vmul.f32 0.0078125, %v1141_v34  ;;  %1601 = vst [vmem:[%s3086_s4 + $0x1d8] sm:$0xff] %v1537_v29  ;;  %v1436_v59 = vmul.f32 %v2700_v60, %v1365_v11  ;;  %2014 = vrsqrt.f32 %v1238_v43  ;;  %v3177_v60 = vld [vmem:[#allocation16_spill] sm:$0xff] }
 0x2b0   :  { %v2005_v20 = vpop.eup %2004  ;;  %1568 = vst [vmem:[%s3086_s4 + $0xd0] sm:$0xff] %v1504_v16  ;;  %v1465_v14 = vmul.f32 %v2018_v62, %v1394_v21 }
 0x2b1   :  { %v1270_v42 = vadd.f32 1e-05, %v1206_v9  ;;  %v2007_v45 = vpop.eup %2006  ;;  %v1507_v61 = vadd.f32 %v2706_v1, %v1436_v59  ;;  %v1397_v48 = vmul.f32 %v2005_v20, %v3176_v2 }
 0x2b2   :  { %v1536_v40 = vadd.f32 %v2706_v1, %v1465_v14  ;;  %v1364_v31 = vmul.f32 %v2007_v45, %v3177_v60 }
 0x2b3   :  { %2016 = vrsqrt.f32 %v1270_v42  ;;  %1571 = vst [vmem:[%s3086_s4 + $0xe8] sm:$0xff] %v1507_v61  ;;  %v1468_v8 = vmul.f32 %v2018_v62, %v1397_v48 }
 0x2b4   :  { %v2009_v30 = vpop.eup %2008  ;;  %1600 = vst [vmem:[%s3086_s4 + $0x1d0] sm:$0xff] %v1536_v40  ;;  %v1435_v32 = vmul.f32 %v2018_v62, %v1364_v31 }
 0x2b5   :  { %v2011_v35 = vpop.eup %2010  ;;  %v1539_v1 = vadd.f32 %v2019_v3, %v1468_v8  ;;  %v1367_v18 = vmul.f32 %v2009_v30, %v3178_v23 }
 0x2b6   :  { %v1506_v50 = vadd.f32 %v2019_v3, %v1435_v32  ;;  %v1396_v4 = vmul.f32 %v2011_v35, %v3179_v33 }
 0x2b7   :  { %1603 = vst [vmem:[%s3086_s4 + $0x1e8] sm:$0xff] %v1539_v1  ;;  %v1438_v12 = vmul.f32 %v2018_v62, %v1367_v18 }
 0x2b8   :  { %v2013_v47 = vpop.eup %2012  ;;  %1570 = vst [vmem:[%s3086_s4 + $0xe0] sm:$0xff] %v1506_v50  ;;  %v1467_v55 = vmul.f32 %v2018_v62, %v1396_v4 }
 0x2b9   :  { %v2015_v46 = vpop.eup %2014  ;;  %v1509_v5 = vadd.f32 %v2019_v3, %v1438_v12  ;;  %v1399_v26 = vmul.f32 %v2013_v47, %v3180_v51 }
 0x2ba   :  { %v1538_v13 = vadd.f32 %v2019_v3, %v1467_v55  ;;  %v1366_v15 = vmul.f32 %v2015_v46, %v3181_v7 }
 0x2bb   :  { %1573 = vst [vmem:[%s3086_s4 + $0xf8] sm:$0xff] %v1509_v5  ;;  %v1470_v38 = vmul.f32 %v2018_v62, %v1399_v26 }
 0x2bc   :  { %1602 = vst [vmem:[%s3086_s4 + $0x1e0] sm:$0xff] %v1538_v13  ;;  %v1437_v49 = vmul.f32 %v2018_v62, %v1366_v15 }
 0x2bd   :  { %v2017_v17 = vpop.eup %2016  ;;  %v1541_v28 = vadd.f32 %v2019_v3, %v1470_v38 }
 0x2be   :  { %v1398_v52 = vmul.f32 %v2017_v17, %v3182_v25  ;;  %v1508_v22 = vadd.f32 %v2019_v3, %v1437_v49 }
 0x2bf   :  { %1605 = vst [vmem:[%s3086_s4 + $0x1f8] sm:$0xff] %v1541_v28 }
 0x2c0   :  { %v1469_v41 = vmul.f32 %v2018_v62, %v1398_v52  ;;  %1572 = vst [vmem:[%s3086_s4 + $0xf0] sm:$0xff] %v1508_v22 }
 0x2c2   :  { %v1540_v0 = vadd.f32 %v2019_v3, %v1469_v41 }
 0x2c4   :  { %1604 = vst [vmem:[%s3086_s4 + $0x1f0] sm:$0xff] %v1540_v0 }
 0x2c5   :  { %1610 = vsyncpa [#allocation3], 1 }
 0x2c6   :  { %1611 = vsyncpa [#allocation5], 1 }

</bundles_post_ra>
